<compile_context>
chip_gen: v7x
topology: tpu7x:2x2x1
jax: 0.10.0
libtpu: 0.0.40
codegen_flags: <defaults>
</compile_context>

<pallas_src>
import math

import jax
import jax.numpy as jnp
from jax import lax
from jax.experimental import pallas as pl
from jax.experimental.pallas import tpu as pltpu

NEG_INF = -1e30


def _round_up(x, m):
    return ((x + m - 1) // m) * m


# ---------------------------------------------------------------------------
# Fused kernel: for one query group, iterate kv groups on the last grid axis,
# accumulate the L1-normalized group mixture online, then residual + LN +
# FFN + residual + LN on the final kv step.
# ---------------------------------------------------------------------------
def _group_layer_kernel(xq_ref, xkv_ref, kmask_ref,
                        wq_ref, bq_ref, wk_ref, bk_ref, wv_ref, bv_ref,
                        wo_ref, bo_ref,
                        w1_ref, b1_ref, w2_ref, b2_ref,
                        g1_ref, be1_ref, g2_ref, be2_ref,
                        y_ref,
                        m_sc, den_sc, num_sc):
    b = pl.program_id(1)

    @pl.when(b == 0)
    def _init():
        m_sc[...] = jnp.full(m_sc.shape, NEG_INF, dtype=jnp.float32)
        den_sc[...] = jnp.zeros(den_sc.shape, dtype=jnp.float32)
        num_sc[...] = jnp.zeros(num_sc.shape, dtype=jnp.float32)

    xq = xq_ref[...]                                   # (La, Da)  f32
    xkv = xkv_ref[...]                                 # (Lk, Dk)  bf16

    # projections: bf16 MXU operands, f32 accumulation. 1/sqrt(inner) is
    # pre-folded into wq / bq.
    q = jnp.dot(xq.astype(jnp.bfloat16), wq_ref[...],
                preferred_element_type=jnp.float32) + bq_ref[...]
    k = jnp.dot(xkv, wk_ref[...],
                preferred_element_type=jnp.float32) + bk_ref[...]
    v = jnp.dot(xkv, wv_ref[...],
                preferred_element_type=jnp.float32) + bv_ref[...]

    # logits = q @ k^T without an explicit transpose of k
    logits = lax.dot_general(q, k,
                             dimension_numbers=(((1,), (1,)), ((), ())),
                             preferred_element_type=jnp.float32)
    logits = logits + kmask_ref[...]                   # padded keys -> -1e30

    m_b = jnp.max(logits, axis=-1, keepdims=True)      # (La, 1)
    p = jnp.exp(logits - m_b)                          # padded keys -> 0
    l_b = jnp.sum(p, axis=-1, keepdims=True)           # (La, 1)

    # normalize after the PV matmul (EUP reciprocal)
    ctx = jnp.dot(p.astype(jnp.bfloat16), v.astype(jnp.bfloat16),
                  preferred_element_type=jnp.float32)
    ctx = ctx * pl.reciprocal(l_b, approx=True)
    out_b = jnp.dot(ctx.astype(jnp.bfloat16), wo_ref[...],
                    preferred_element_type=jnp.float32) + bo_ref[...]  # (La, Da)

    # online, overflow-safe accumulation of  sum_b exp(m_b)*l_b*out_b  and
    # sum_b exp(m_b)*l_b  (the L1 group mixture), shifted by the running max.
    m_prev = m_sc[...]
    m_new = jnp.maximum(m_prev, m_b)
    alpha = jnp.exp(m_prev - m_new)
    w_b = jnp.exp(m_b - m_new) * l_b
    den_sc[...] = alpha * den_sc[...] + w_b
    num_sc[...] = alpha * num_sc[...] + w_b * out_b
    m_sc[...] = m_new

    @pl.when(b == pl.num_programs(1) - 1)
    def _finalize():
        mix = num_sc[...] / den_sc[...]                # L1-normalized mixture

        # residual + LayerNorm (eps = 1e-7)
        h = xq + mix
        mu = jnp.mean(h, axis=-1, keepdims=True)
        var = jnp.mean(jnp.square(h - mu), axis=-1, keepdims=True)
        h1 = (h - mu) * lax.rsqrt(var + 1e-7) * g1_ref[...] + be1_ref[...]

        # feed-forward: Linear -> ReLU -> Linear  (bf16 MXU, f32 accum)
        ff = jnp.dot(h1.astype(jnp.bfloat16), w1_ref[...],
                     preferred_element_type=jnp.float32) + b1_ref[...]
        ff = jnp.maximum(ff, 0.0)
        ff = jnp.dot(ff.astype(jnp.bfloat16), w2_ref[...],
                     preferred_element_type=jnp.float32) + b2_ref[...]

        # residual + LayerNorm (eps = 1e-7)
        z = h1 + ff
        mu2 = jnp.mean(z, axis=-1, keepdims=True)
        var2 = jnp.mean(jnp.square(z - mu2), axis=-1, keepdims=True)
        y_ref[...] = ((z - mu2) * lax.rsqrt(var2 + 1e-7) * g2_ref[...]
                      + be2_ref[...]).astype(y_ref.dtype)


def _run_group(xq, xkv_stacked, kmask, gp):
    """xq: (B, La, Da) f32; xkv_stacked: (G, B, Lk, Dk) bf16; kmask: (G,1,Lk)."""
    B, La, Da = xq.shape
    G, _, Lk, Dk = xkv_stacked.shape

    def const(arr):
        nd = arr.ndim
        return pl.BlockSpec(arr.shape, lambda i, b, nd=nd: (0,) * nd)

    def per_b(arr):
        nd = arr.ndim
        return pl.BlockSpec((None,) + arr.shape[1:],
                            lambda i, b, nd=nd: (b,) + (0,) * (nd - 1))

    return pl.pallas_call(
        _group_layer_kernel,
        out_shape=jax.ShapeDtypeStruct((B, La, Da), jnp.float32),
        grid=(B, G),
        in_specs=[
            pl.BlockSpec((None, La, Da), lambda i, b: (i, 0, 0)),          # xq
            pl.BlockSpec((None, None, Lk, Dk), lambda i, b: (b, i, 0, 0)),  # xkv
            per_b(kmask),
            per_b(gp["wq"]), per_b(gp["bq"]),
            per_b(gp["wk"]), per_b(gp["bk"]),
            per_b(gp["wv"]), per_b(gp["bv"]),
            per_b(gp["wo"]), per_b(gp["bo"]),
            const(gp["w1"]), const(gp["b1"]),
            const(gp["w2"]), const(gp["b2"]),
            const(gp["ln1_g"]), const(gp["ln1_b"]),
            const(gp["ln2_g"]), const(gp["ln2_b"]),
        ],
        out_specs=pl.BlockSpec((None, La, Da), lambda i, b: (i, 0, 0)),
        scratch_shapes=[
            pltpu.VMEM((La, 1), jnp.float32),    # running max
            pltpu.VMEM((La, 1), jnp.float32),    # denominator
            pltpu.VMEM((La, Da), jnp.float32),   # numerator
        ],
        compiler_params=pltpu.CompilerParams(
            dimension_semantics=("parallel", "arbitrary")),
    )(xq, xkv_stacked, kmask,
      gp["wq"], gp["bq"], gp["wk"], gp["bk"], gp["wv"], gp["bv"],
      gp["wo"], gp["bo"],
      gp["w1"], gp["b1"], gp["w2"], gp["b2"],
      gp["ln1_g"], gp["ln1_b"], gp["ln2_g"], gp["ln2_b"])


# ---------------------------------------------------------------------------
# Wrapper-level packing (padding / stacking of kv activations and masks)
# ---------------------------------------------------------------------------
def _stack_kv(words, lk_pad, dk_pad):
    xs = []
    for w in words:
        _, L, D = w.shape
        xs.append(jnp.pad(w, ((0, 0), (0, lk_pad - L), (0, dk_pad - D))))
    return jnp.stack(xs, axis=0).astype(jnp.bfloat16)   # (G, B, Lk, Dk)


def _build_kmask(seq_lens, lk_pad):
    rows = [jnp.where(jnp.arange(lk_pad) < L, 0.0, NEG_INF) for L in seq_lens]
    return jnp.stack(rows)[:, None, :].astype(jnp.float32)   # (G, 1, Lk)


def grouped_transformer_encoder_layer(words, params):
    G = len(words)
    dk_pad = params["DK_PAD"]
    lk_pad = _round_up(max(w.shape[1] for w in words), 16)
    xkv = _stack_kv(words, lk_pad, dk_pad)
    kmask = _build_kmask([w.shape[1] for w in words], lk_pad)
    return [_run_group(words[a], xkv, kmask, params["group"][a]) for a in range(G)]
    # TODO(synk): query-side seq/feature dims are left unpadded (full-array
    # BlockSpec exception); pad + mask them too for lane-dense tiles at large D.


# ---------------------------------------------------------------------------
# Deterministic parameter construction (stacked / padded / scale-folded)
# ---------------------------------------------------------------------------
def init_params(key, group_features, ff_features):
    G = len(group_features)
    inner = {(a, b): min(group_features[a], group_features[b]) // 2
             for a in range(G) for b in range(G)}
    dk_pad = _round_up(max(group_features), 128)
    i_pad = _round_up(max(inner.values()), 128)
    o_pad = i_pad

    keys = iter(jax.random.split(key, 8 * G * G + 4 * G))

    def lin(din, dout):
        w = jax.random.normal(next(keys), (din, dout), jnp.float32) / math.sqrt(din)
        b = 0.01 * jax.random.normal(next(keys), (1, dout), jnp.float32)
        return w, b

    groups = []
    for a in range(G):
        da = group_features[a]
        wq_s, bq_s, wk_s, bk_s, wv_s, bv_s, wo_s, bo_s = ([] for _ in range(8))
        for b in range(G):
            db = group_features[b]
            inn = inner[(a, b)]
            out = inn
            scale = 1.0 / math.sqrt(inn)
            wq, bq = lin(da, inn)
            wk, bk = lin(db, inn)
            wv, bv = lin(db, out)
            wo, bo = lin(out, da)                 # output_features[a] == group_features[a]
            wq_s.append(jnp.pad(wq * scale, ((0, 0), (0, i_pad - inn))))
            bq_s.append(jnp.pad(bq * scale, ((0, 0), (0, i_pad - inn))))
            wk_s.append(jnp.pad(wk, ((0, dk_pad - db), (0, i_pad - inn))))
            bk_s.append(jnp.pad(bk, ((0, 0), (0, i_pad - inn))))
            wv_s.append(jnp.pad(wv, ((0, dk_pad - db), (0, o_pad - out))))
            bv_s.append(jnp.pad(bv, ((0, 0), (0, o_pad - out))))
            wo_s.append(jnp.pad(wo, ((0, o_pad - out), (0, 0))))
            bo_s.append(bo)
        fa = ff_features[a]
        w1, b1 = lin(da, fa)
        w2, b2 = lin(fa, da)
        groups.append(dict(
            wq=jnp.stack(wq_s).astype(jnp.bfloat16), bq=jnp.stack(bq_s),
            wk=jnp.stack(wk_s).astype(jnp.bfloat16), bk=jnp.stack(bk_s),
            wv=jnp.stack(wv_s).astype(jnp.bfloat16), bv=jnp.stack(bv_s),
            wo=jnp.stack(wo_s).astype(jnp.bfloat16), bo=jnp.stack(bo_s),
            w1=w1.astype(jnp.bfloat16), b1=b1,
            w2=w2.astype(jnp.bfloat16), b2=b2,
            ln1_g=jnp.ones((1, da), jnp.float32), ln1_b=jnp.zeros((1, da), jnp.float32),
            ln2_g=jnp.ones((1, da), jnp.float32), ln2_b=jnp.zeros((1, da), jnp.float32)))
    return dict(group=groups, DK_PAD=dk_pad)


# ---------------------------------------------------------------------------
# Pure-JAX reference (same packed params / same matmul precision)
# ---------------------------------------------------------------------------
def _layer_norm(x, g, b, eps=1e-7):
    mu = jnp.mean(x, axis=-1, keepdims=True)
    var = jnp.mean(jnp.square(x - mu), axis=-1, keepdims=True)
    return (x - mu) * lax.rsqrt(var + eps) * g + b


def _reference_layer(words, params):
    G = len(words)
    dk_pad = params["DK_PAD"]
    lk_pad = _round_up(max(w.shape[1] for w in words), 16)
    xkv = _stack_kv(words, lk_pad, dk_pad)
    kmask = _build_kmask([w.shape[1] for w in words], lk_pad)
    outs = []
    for a in range(G):
        gp = params["group"][a]
        x = words[a]
        s_list, o_list = [], []
        for b in range(G):
            q = jnp.einsum("bld,di->bli", x.astype(jnp.bfloat16), gp["wq"][b],
                           preferred_element_type=jnp.float32) + gp["bq"][b]
            k = jnp.einsum("bld,di->bli", xkv[b], gp["wk"][b],
                           preferred_element_type=jnp.float32) + gp["bk"][b]
            v = jnp.einsum("bld,do->blo", xkv[b], gp["wv"][b],
                           preferred_element_type=jnp.float32) + gp["bv"][b]
            logits = jnp.einsum("bqi,bki->bqk", q, k,
                                preferred_element_type=jnp.float32) + kmask[b]
            m = jnp.max(logits, axis=-1, keepdims=True)
            p = jnp.exp(logits - m)
            l = jnp.sum(p, axis=-1, keepdims=True)
            ctx = jnp.einsum("bqk,bko->bqo", p.astype(jnp.bfloat16),
                             v.astype(jnp.bfloat16),
                             preferred_element_type=jnp.float32) / l
            o = jnp.einsum("bqo,od->bqd", ctx.astype(jnp.bfloat16), gp["wo"][b],
                           preferred_element_type=jnp.float32) + gp["bo"][b]
            s_list.append(jnp.exp(m) * l)
            o_list.append(o)
        s = jnp.stack(s_list, axis=0)
        o = jnp.stack(o_list, axis=0)
        w = s / jnp.sum(s, axis=0, keepdims=True)
        mix = jnp.sum(o * w, axis=0)
        h1 = _layer_norm(x + mix, gp["ln1_g"], gp["ln1_b"])
        ff = jnp.maximum(jnp.einsum("bld,df->blf", h1.astype(jnp.bfloat16), gp["w1"],
                                    preferred_element_type=jnp.float32) + gp["b1"], 0.0)
        ff = jnp.einsum("blf,fd->bld", ff.astype(jnp.bfloat16), gp["w2"],
                        preferred_element_type=jnp.float32) + gp["b2"]
        outs.append(_layer_norm(h1 + ff, gp["ln2_g"], gp["ln2_b"]))
    return outs


if __name__ == "__main__":
    # small shapes consistent with the module defaults (scaled down)
    group_features = (32, 16)
    ff_features = (64, 32)
    batch = 2
    seqs = (8, 16)

    key = jax.random.PRNGKey(0)
    kp, kw0, kw1 = jax.random.split(key, 3)
    params = init_params(kp, group_features, ff_features)

    words = [
        jax.random.normal(kw0, (batch, seqs[0], group_features[0]), jnp.float32),
        jax.random.normal(kw1, (batch, seqs[1], group_features[1]), jnp.float32),
    ]

    outs = grouped_transformer_encoder_layer(words, params)
    outs = jax.block_until_ready(outs)
    refs = jax.block_until_ready(_reference_layer(words, params))

    assert outs[0].shape == (batch, seqs[0], group_features[0])
    assert outs[1].shape == (batch, seqs[1], group_features[1])
    for o, r in zip(outs, refs):
        assert bool(jnp.all(jnp.isfinite(o)))
        assert bool(jnp.allclose(o, r, atol=3e-2, rtol=3e-2))
    # TODO(synk): dropout is a no-op (p=0.0) and is omitted.
    print("KERNEL_OK")
</pallas_src>

<mosaic_0001>
module attributes {stable_mosaic.version = 11 : i64} {
  func.func @_group_layer_kernel(%arg0: i32, %arg1: i32, %arg2: memref<1x8x32xf32, #tpu.memory_space<vmem>>, %arg3: memref<1x1x16x128xbf16, #tpu.memory_space<vmem>>, %arg4: memref<1x1x16xf32, #tpu.memory_space<vmem>>, %arg5: memref<1x32x128xbf16, #tpu.memory_space<vmem>>, %arg6: memref<1x1x128xf32, #tpu.memory_space<vmem>>, %arg7: memref<1x128x128xbf16, #tpu.memory_space<vmem>>, %arg8: memref<1x1x128xf32, #tpu.memory_space<vmem>>, %arg9: memref<1x128x128xbf16, #tpu.memory_space<vmem>>, %arg10: memref<1x1x128xf32, #tpu.memory_space<vmem>>, %arg11: memref<1x128x32xbf16, #tpu.memory_space<vmem>>, %arg12: memref<1x1x32xf32, #tpu.memory_space<vmem>>, %arg13: memref<32x64xbf16, #tpu.memory_space<vmem>>, %arg14: memref<1x64xf32, #tpu.memory_space<vmem>>, %arg15: memref<64x32xbf16, #tpu.memory_space<vmem>>, %arg16: memref<1x32xf32, #tpu.memory_space<vmem>>, %arg17: memref<1x32xf32, #tpu.memory_space<vmem>>, %arg18: memref<1x32xf32, #tpu.memory_space<vmem>>, %arg19: memref<1x32xf32, #tpu.memory_space<vmem>>, %arg20: memref<1x32xf32, #tpu.memory_space<vmem>>, %arg21: memref<1x8x32xf32, #tpu.memory_space<vmem>>, %arg22: memref<8x1xf32, #tpu.memory_space<vmem>>, %arg23: memref<8x1xf32, #tpu.memory_space<vmem>>, %arg24: memref<8x32xf32, #tpu.memory_space<vmem>>) attributes {dimension_semantics = [#tpu.dimension_semantics<parallel>, #tpu.dimension_semantics<arbitrary>], iteration_bounds = array<i64: 2, 2>, scalar_prefetch = 0 : i64, scratch_operands = 3 : i64, tpu.core_type = #tpu.core_type<tc>, window_params = [{transform_indices = @transform_0, window_bounds = array<i64: 1, 8, 32>}, {transform_indices = @transform_1, window_bounds = array<i64: 1, 1, 16, 128>}, {transform_indices = @transform_2, window_bounds = array<i64: 1, 1, 16>}, {transform_indices = @transform_3, window_bounds = array<i64: 1, 32, 128>}, {transform_indices = @transform_4, window_bounds = array<i64: 1, 1, 128>}, {transform_indices = @transform_5, window_bounds = array<i64: 1, 128, 128>}, {transform_indices = @transform_6, window_bounds = array<i64: 1, 1, 128>}, {transform_indices = @transform_7, window_bounds = array<i64: 1, 128, 128>}, {transform_indices = @transform_8, window_bounds = array<i64: 1, 1, 128>}, {transform_indices = @transform_9, window_bounds = array<i64: 1, 128, 32>}, {transform_indices = @transform_10, window_bounds = array<i64: 1, 1, 32>}, {pipeline_mode = #tpu.pipeline_mode<synchronous>, transform_indices = @transform_11, window_bounds = array<i64: 32, 64>}, {pipeline_mode = #tpu.pipeline_mode<synchronous>, transform_indices = @transform_12, window_bounds = array<i64: 1, 64>}, {pipeline_mode = #tpu.pipeline_mode<synchronous>, transform_indices = @transform_13, window_bounds = array<i64: 64, 32>}, {pipeline_mode = #tpu.pipeline_mode<synchronous>, transform_indices = @transform_14, window_bounds = array<i64: 1, 32>}, {pipeline_mode = #tpu.pipeline_mode<synchronous>, transform_indices = @transform_15, window_bounds = array<i64: 1, 32>}, {pipeline_mode = #tpu.pipeline_mode<synchronous>, transform_indices = @transform_16, window_bounds = array<i64: 1, 32>}, {pipeline_mode = #tpu.pipeline_mode<synchronous>, transform_indices = @transform_17, window_bounds = array<i64: 1, 32>}, {pipeline_mode = #tpu.pipeline_mode<synchronous>, transform_indices = @transform_18, window_bounds = array<i64: 1, 32>}, {transform_indices = @transform_19, window_bounds = array<i64: 1, 8, 32>}]} {
    %c0_i32 = arith.constant 0 : i32
    %0 = arith.cmpi eq, %arg1, %c0_i32 : i32
    %1 = arith.extui %0 : i1 to i32
    %c0_i32_0 = arith.constant 0 : i32
    %2 = arith.cmpi ne, %1, %c0_i32_0 : i32
    scf.if %2 {
      %cst_54 = arith.constant -1.000000e+30 : f32
      %77 = vector.broadcast %cst_54 : f32 to vector<8x1xf32>
      %c0_55 = arith.constant 0 : index
      %c0_56 = arith.constant 0 : index
      %78 = vector.load %arg22[%c0_55, %c0_56] : memref<8x1xf32, #tpu.memory_space<vmem>>, vector<8x1xf32>
      tpu.vector_store %arg22[%c0_55, %c0_56], %77 {strides = array<i32>} : memref<8x1xf32, #tpu.memory_space<vmem>>, vector<8x1xf32>,
      %cst_57 = arith.constant 0.000000e+00 : f32
      %79 = vector.broadcast %cst_57 : f32 to vector<8x1xf32>
      %c0_58 = arith.constant 0 : index
      %c0_59 = arith.constant 0 : index
      %80 = vector.load %arg23[%c0_58, %c0_59] : memref<8x1xf32, #tpu.memory_space<vmem>>, vector<8x1xf32>
      tpu.vector_store %arg23[%c0_58, %c0_59], %79 {strides = array<i32>} : memref<8x1xf32, #tpu.memory_space<vmem>>, vector<8x1xf32>,
      %cst_60 = arith.constant 0.000000e+00 : f32
      %81 = vector.broadcast %cst_60 : f32 to vector<8x32xf32>
      %c0_61 = arith.constant 0 : index
      %c0_62 = arith.constant 0 : index
      %82 = vector.load %arg24[%c0_61, %c0_62] : memref<8x32xf32, #tpu.memory_space<vmem>>, vector<8x32xf32>
      tpu.vector_store %arg24[%c0_61, %c0_62], %81 {strides = array<i32>} : memref<8x32xf32, #tpu.memory_space<vmem>>, vector<8x32xf32>,
    } else {
    }
    %c0 = arith.constant 0 : index
    %c0_1 = arith.constant 0 : index
    %c0_2 = arith.constant 0 : index
    %3 = vector.load %arg2[%c0, %c0_1, %c0_2] : memref<1x8x32xf32, #tpu.memory_space<vmem>>, vector<1x8x32xf32>
    %4 = vector.shape_cast %3 : vector<1x8x32xf32> to vector<8x32xf32>
    %c0_3 = arith.constant 0 : index
    %c0_4 = arith.constant 0 : index
    %c0_5 = arith.constant 0 : index
    %c0_6 = arith.constant 0 : index
    %5 = vector.load %arg3[%c0_3, %c0_4, %c0_5, %c0_6] : memref<1x1x16x128xbf16, #tpu.memory_space<vmem>>, vector<1x1x16x128xbf16>
    %6 = vector.shape_cast %5 : vector<1x1x16x128xbf16> to vector<16x128xbf16>
    %7 = arith.truncf %4 : vector<8x32xf32> to vector<8x32xbf16>
    %c0_7 = arith.constant 0 : index
    %c0_8 = arith.constant 0 : index
    %c0_9 = arith.constant 0 : index
    %8 = vector.load %arg5[%c0_7, %c0_8, %c0_9] : memref<1x32x128xbf16, #tpu.memory_space<vmem>>, vector<1x32x128xbf16>
    %9 = vector.shape_cast %8 : vector<1x32x128xbf16> to vector<32x128xbf16>
    %cst = arith.constant dense<0.000000e+00> : vector<8x128xf32>
    %10 = tpu.matmul %7, %9, %cst {dimension_numbers = #tpu.dot_dimension_numbers<[1], [0], [0], [1], [0, 0, 1, 1], [], []>} : vector<8x32xbf16>, vector<32x128xbf16>, vector<8x128xf32> -> vector<8x128xf32>
    %c0_10 = arith.constant 0 : index
    %c0_11 = arith.constant 0 : index
    %c0_12 = arith.constant 0 : index
    %11 = vector.load %arg6[%c0_10, %c0_11, %c0_12] : memref<1x1x128xf32, #tpu.memory_space<vmem>>, vector<1x1x128xf32>
    %12 = vector.shape_cast %11 : vector<1x1x128xf32> to vector<1x128xf32>
    %13 = vector.broadcast %12 : vector<1x128xf32> to vector<8x128xf32>
    %14 = arith.addf %10, %13 : vector<8x128xf32>
    %c0_13 = arith.constant 0 : index
    %c0_14 = arith.constant 0 : index
    %c0_15 = arith.constant 0 : index
    %15 = vector.load %arg7[%c0_13, %c0_14, %c0_15] : memref<1x128x128xbf16, #tpu.memory_space<vmem>>, vector<1x128x128xbf16>
    %16 = vector.shape_cast %15 : vector<1x128x128xbf16> to vector<128x128xbf16>
    %cst_16 = arith.constant dense<0.000000e+00> : vector<16x128xf32>
    %17 = tpu.matmul %6, %16, %cst_16 {dimension_numbers = #tpu.dot_dimension_numbers<[1], [0], [0], [1], [0, 0, 1, 1], [], []>} : vector<16x128xbf16>, vector<128x128xbf16>, vector<16x128xf32> -> vector<16x128xf32>
    %c0_17 = arith.constant 0 : index
    %c0_18 = arith.constant 0 : index
    %c0_19 = arith.constant 0 : index
    %18 = vector.load %arg8[%c0_17, %c0_18, %c0_19] : memref<1x1x128xf32, #tpu.memory_space<vmem>>, vector<1x1x128xf32>
    %19 = vector.shape_cast %18 : vector<1x1x128xf32> to vector<1x128xf32>
    %20 = vector.broadcast %19 : vector<1x128xf32> to vector<16x128xf32>
    %21 = arith.addf %17, %20 : vector<16x128xf32>
    %c0_20 = arith.constant 0 : index
    %c0_21 = arith.constant 0 : index
    %c0_22 = arith.constant 0 : index
    %22 = vector.load %arg9[%c0_20, %c0_21, %c0_22] : memref<1x128x128xbf16, #tpu.memory_space<vmem>>, vector<1x128x128xbf16>
    %23 = vector.shape_cast %22 : vector<1x128x128xbf16> to vector<128x128xbf16>
    %cst_23 = arith.constant dense<0.000000e+00> : vector<16x128xf32>
    %24 = tpu.matmul %6, %23, %cst_23 {dimension_numbers = #tpu.dot_dimension_numbers<[1], [0], [0], [1], [0, 0, 1, 1], [], []>} : vector<16x128xbf16>, vector<128x128xbf16>, vector<16x128xf32> -> vector<16x128xf32>
    %c0_24 = arith.constant 0 : index
    %c0_25 = arith.constant 0 : index
    %c0_26 = arith.constant 0 : index
    %25 = vector.load %arg10[%c0_24, %c0_25, %c0_26] : memref<1x1x128xf32, #tpu.memory_space<vmem>>, vector<1x1x128xf32>
    %26 = vector.shape_cast %25 : vector<1x1x128xf32> to vector<1x128xf32>
    %27 = vector.broadcast %26 : vector<1x128xf32> to vector<16x128xf32>
    %28 = arith.addf %24, %27 : vector<16x128xf32>
    %cst_27 = arith.constant dense<0.000000e+00> : vector<8x16xf32>
    %29 = tpu.matmul %14, %21, %cst_27 {dimension_numbers = #tpu.dot_dimension_numbers<[1], [1], [0], [0], [0, 0, 1, 0], [], []>} : vector<8x128xf32>, vector<16x128xf32>, vector<8x16xf32> -> vector<8x16xf32>
    %c0_28 = arith.constant 0 : index
    %c0_29 = arith.constant 0 : index
    %c0_30 = arith.constant 0 : index
    %30 = vector.load %arg4[%c0_28, %c0_29, %c0_30] : memref<1x1x16xf32, #tpu.memory_space<vmem>>, vector<1x1x16xf32>
    %31 = vector.shape_cast %30 : vector<1x1x16xf32> to vector<1x16xf32>
    %32 = vector.broadcast %31 : vector<1x16xf32> to vector<8x16xf32>
    %33 = arith.addf %29, %32 : vector<8x16xf32>
    %cst_31 = arith.constant dense<0xFF800000> : vector<8xf32>
    %34 = vector.multi_reduction <maximumf>, %33, %cst_31 [1] : vector<8x16xf32> to vector<8xf32>
    %35 = vector.shape_cast %34 : vector<8xf32> to vector<8x1xf32>
    %36 = vector.broadcast %35 : vector<8x1xf32> to vector<8x16xf32>
    %37 = arith.subf %33, %36 : vector<8x16xf32>
    %38 = math.exp %37 : vector<8x16xf32>
    %cst_32 = arith.constant dense<0.000000e+00> : vector<8xf32>
    %39 = vector.multi_reduction <add>, %38, %cst_32 [1] : vector<8x16xf32> to vector<8xf32>
    %40 = vector.shape_cast %39 : vector<8xf32> to vector<8x1xf32>
    %41 = arith.truncf %38 : vector<8x16xf32> to vector<8x16xbf16>
    %42 = arith.truncf %28 : vector<16x128xf32> to vector<16x128xbf16>
    %cst_33 = arith.constant dense<0.000000e+00> : vector<8x128xf32>
    %43 = tpu.matmul %41, %42, %cst_33 {dimension_numbers = #tpu.dot_dimension_numbers<[1], [0], [0], [1], [0, 0, 1, 1], [], []>} : vector<8x16xbf16>, vector<16x128xbf16>, vector<8x128xf32> -> vector<8x128xf32>
    %44 = tpu.reciprocal %40 {approx = true} : vector<8x1xf32> -> vector<8x1xf32>
    %45 = vector.broadcast %44 : vector<8x1xf32> to vector<8x128xf32>
    %46 = arith.mulf %43, %45 : vector<8x128xf32>
    %47 = arith.truncf %46 : vector<8x128xf32> to vector<8x128xbf16>
    %c0_34 = arith.constant 0 : index
    %c0_35 = arith.constant 0 : index
    %c0_36 = arith.constant 0 : index
    %48 = vector.load %arg11[%c0_34, %c0_35, %c0_36] : memref<1x128x32xbf16, #tpu.memory_space<vmem>>, vector<1x128x32xbf16>
    %49 = vector.shape_cast %48 : vector<1x128x32xbf16> to vector<128x32xbf16>
    %cst_37 = arith.constant dense<0.000000e+00> : vector<8x32xf32>
    %50 = tpu.matmul %47, %49, %cst_37 {dimension_numbers = #tpu.dot_dimension_numbers<[1], [0], [0], [1], [0, 0, 1, 1], [], []>} : vector<8x128xbf16>, vector<128x32xbf16>, vector<8x32xf32> -> vector<8x32xf32>
    %c0_38 = arith.constant 0 : index
    %c0_39 = arith.constant 0 : index
    %c0_40 = arith.constant 0 : index
    %51 = vector.load %arg12[%c0_38, %c0_39, %c0_40] : memref<1x1x32xf32, #tpu.memory_space<vmem>>, vector<1x1x32xf32>
    %52 = vector.shape_cast %51 : vector<1x1x32xf32> to vector<1x32xf32>
    %53 = vector.broadcast %52 : vector<1x32xf32> to vector<8x32xf32>
    %54 = arith.addf %50, %53 : vector<8x32xf32>
    %c0_41 = arith.constant 0 : index
    %c0_42 = arith.constant 0 : index
    %55 = vector.load %arg22[%c0_41, %c0_42] : memref<8x1xf32, #tpu.memory_space<vmem>>, vector<8x1xf32>
    %56 = arith.maximumf %55, %35 : vector<8x1xf32>
    %57 = arith.subf %55, %56 : vector<8x1xf32>
    %58 = math.exp %57 : vector<8x1xf32>
    %59 = arith.subf %35, %56 : vector<8x1xf32>
    %60 = math.exp %59 : vector<8x1xf32>
    %61 = arith.mulf %60, %40 : vector<8x1xf32>
    %c0_43 = arith.constant 0 : index
    %c0_44 = arith.constant 0 : index
    %62 = vector.load %arg23[%c0_43, %c0_44] : memref<8x1xf32, #tpu.memory_space<vmem>>, vector<8x1xf32>
    %63 = arith.mulf %58, %62 : vector<8x1xf32>
    %64 = arith.addf %63, %61 : vector<8x1xf32>
    %c0_45 = arith.constant 0 : index
    %c0_46 = arith.constant 0 : index
    %65 = vector.load %arg23[%c0_45, %c0_46] : memref<8x1xf32, #tpu.memory_space<vmem>>, vector<8x1xf32>
    tpu.vector_store %arg23[%c0_45, %c0_46], %64 {strides = array<i32>} : memref<8x1xf32, #tpu.memory_space<vmem>>, vector<8x1xf32>,
    %c0_47 = arith.constant 0 : index
    %c0_48 = arith.constant 0 : index
    %66 = vector.load %arg24[%c0_47, %c0_48] : memref<8x32xf32, #tpu.memory_space<vmem>>, vector<8x32xf32>
    %67 = vector.broadcast %58 : vector<8x1xf32> to vector<8x32xf32>
    %68 = arith.mulf %67, %66 : vector<8x32xf32>
    %69 = vector.broadcast %61 : vector<8x1xf32> to vector<8x32xf32>
    %70 = arith.mulf %69, %54 : vector<8x32xf32>
    %71 = arith.addf %68, %70 : vector<8x32xf32>
    %c0_49 = arith.constant 0 : index
    %c0_50 = arith.constant 0 : index
    %72 = vector.load %arg24[%c0_49, %c0_50] : memref<8x32xf32, #tpu.memory_space<vmem>>, vector<8x32xf32>
    tpu.vector_store %arg24[%c0_49, %c0_50], %71 {strides = array<i32>} : memref<8x32xf32, #tpu.memory_space<vmem>>, vector<8x32xf32>,
    %c0_51 = arith.constant 0 : index
    %c0_52 = arith.constant 0 : index
    %73 = vector.load %arg22[%c0_51, %c0_52] : memref<8x1xf32, #tpu.memory_space<vmem>>, vector<8x1xf32>
    tpu.vector_store %arg22[%c0_51, %c0_52], %56 {strides = array<i32>} : memref<8x1xf32, #tpu.memory_space<vmem>>, vector<8x1xf32>,
    %c1_i32 = arith.constant 1 : i32
    %74 = arith.cmpi eq, %arg1, %c1_i32 : i32
    %75 = arith.extui %74 : i1 to i32
    %c0_i32_53 = arith.constant 0 : i32
    %76 = arith.cmpi ne, %75, %c0_i32_53 : i32
    scf.if %76 {
      %c0_54 = arith.constant 0 : index
      %c0_55 = arith.constant 0 : index
      %77 = vector.load %arg24[%c0_54, %c0_55] : memref<8x32xf32, #tpu.memory_space<vmem>>, vector<8x32xf32>
      %c0_56 = arith.constant 0 : index
      %c0_57 = arith.constant 0 : index
      %78 = vector.load %arg23[%c0_56, %c0_57] : memref<8x1xf32, #tpu.memory_space<vmem>>, vector<8x1xf32>
      %79 = vector.broadcast %78 : vector<8x1xf32> to vector<8x32xf32>
      %80 = arith.divf %77, %79 : vector<8x32xf32>
      %81 = arith.addf %4, %80 : vector<8x32xf32>
      %cst_58 = arith.constant dense<0.000000e+00> : vector<8xf32>
      %82 = vector.multi_reduction <add>, %81, %cst_58 [1] : vector<8x32xf32> to vector<8xf32>
      %83 = vector.shape_cast %82 : vector<8xf32> to vector<8x1xf32>
      %cst_59 = arith.constant 3.200000e+01 : f32
      %84 = vector.broadcast %cst_59 : f32 to vector<8x1xf32>
      %85 = arith.divf %83, %84 : vector<8x1xf32>
      %86 = vector.broadcast %85 : vector<8x1xf32> to vector<8x32xf32>
      %87 = arith.subf %81, %86 : vector<8x32xf32>
      %88 = arith.mulf %87, %87 : vector<8x32xf32>
      %cst_60 = arith.constant dense<0.000000e+00> : vector<8xf32>
      %89 = vector.multi_reduction <add>, %88, %cst_60 [1] : vector<8x32xf32> to vector<8xf32>
      %90 = vector.shape_cast %89 : vector<8xf32> to vector<8x1xf32>
      %cst_61 = arith.constant 3.200000e+01 : f32
      %91 = vector.broadcast %cst_61 : f32 to vector<8x1xf32>
      %92 = arith.divf %90, %91 : vector<8x1xf32>
      %93 = vector.broadcast %85 : vector<8x1xf32> to vector<8x32xf32>
      %94 = arith.subf %81, %93 : vector<8x32xf32>
      %cst_62 = arith.constant 1.000000e-07 : f32
      %95 = vector.broadcast %cst_62 : f32 to vector<8x1xf32>
      %96 = arith.addf %92, %95 : vector<8x1xf32>
      %97 = math.rsqrt %96 : vector<8x1xf32>
      %98 = vector.broadcast %97 : vector<8x1xf32> to vector<8x32xf32>
      %99 = arith.mulf %94, %98 : vector<8x32xf32>
      %c0_63 = arith.constant 0 : index
      %c0_64 = arith.constant 0 : index
      %100 = vector.load %arg17[%c0_63, %c0_64] : memref<1x32xf32, #tpu.memory_space<vmem>>, vector<1x32xf32>
      %101 = vector.broadcast %100 : vector<1x32xf32> to vector<8x32xf32>
      %102 = arith.mulf %99, %101 : vector<8x32xf32>
      %c0_65 = arith.constant 0 : index
      %c0_66 = arith.constant 0 : index
      %103 = vector.load %arg18[%c0_65, %c0_66] : memref<1x32xf32, #tpu.memory_space<vmem>>, vector<1x32xf32>
      %104 = vector.broadcast %103 : vector<1x32xf32> to vector<8x32xf32>
      %105 = arith.addf %102, %104 : vector<8x32xf32>
      %106 = arith.truncf %105 : vector<8x32xf32> to vector<8x32xbf16>
      %c0_67 = arith.constant 0 : index
      %c0_68 = arith.constant 0 : index
      %107 = vector.load %arg13[%c0_67, %c0_68] : memref<32x64xbf16, #tpu.memory_space<vmem>>, vector<32x64xbf16>
      %cst_69 = arith.constant dense<0.000000e+00> : vector<8x64xf32>
      %108 = tpu.matmul %106, %107, %cst_69 {dimension_numbers = #tpu.dot_dimension_numbers<[1], [0], [0], [1], [0, 0, 1, 1], [], []>} : vector<8x32xbf16>, vector<32x64xbf16>, vector<8x64xf32> -> vector<8x64xf32>
      %c0_70 = arith.constant 0 : index
      %c0_71 = arith.constant 0 : index
      %109 = vector.load %arg14[%c0_70, %c0_71] : memref<1x64xf32, #tpu.memory_space<vmem>>, vector<1x64xf32>
      %110 = vector.broadcast %109 : vector<1x64xf32> to vector<8x64xf32>
      %111 = arith.addf %108, %110 : vector<8x64xf32>
      %cst_72 = arith.constant 0.000000e+00 : f32
      %112 = vector.broadcast %cst_72 : f32 to vector<8x64xf32>
      %113 = arith.maximumf %111, %112 : vector<8x64xf32>
      %114 = arith.truncf %113 : vector<8x64xf32> to vector<8x64xbf16>
      %c0_73 = arith.constant 0 : index
      %c0_74 = arith.constant 0 : index
      %115 = vector.load %arg15[%c0_73, %c0_74] : memref<64x32xbf16, #tpu.memory_space<vmem>>, vector<64x32xbf16>
      %cst_75 = arith.constant dense<0.000000e+00> : vector<8x32xf32>
      %116 = tpu.matmul %114, %115, %cst_75 {dimension_numbers = #tpu.dot_dimension_numbers<[1], [0], [0], [1], [0, 0, 1, 1], [], []>} : vector<8x64xbf16>, vector<64x32xbf16>, vector<8x32xf32> -> vector<8x32xf32>
      %c0_76 = arith.constant 0 : index
      %c0_77 = arith.constant 0 : index
      %117 = vector.load %arg16[%c0_76, %c0_77] : memref<1x32xf32, #tpu.memory_space<vmem>>, vector<1x32xf32>
      %118 = vector.broadcast %117 : vector<1x32xf32> to vector<8x32xf32>
      %119 = arith.addf %116, %118 : vector<8x32xf32>
      %120 = arith.addf %105, %119 : vector<8x32xf32>
      %cst_78 = arith.constant dense<0.000000e+00> : vector<8xf32>
      %121 = vector.multi_reduction <add>, %120, %cst_78 [1] : vector<8x32xf32> to vector<8xf32>
      %122 = vector.shape_cast %121 : vector<8xf32> to vector<8x1xf32>
      %cst_79 = arith.constant 3.200000e+01 : f32
      %123 = vector.broadcast %cst_79 : f32 to vector<8x1xf32>
      %124 = arith.divf %122, %123 : vector<8x1xf32>
      %125 = vector.broadcast %124 : vector<8x1xf32> to vector<8x32xf32>
      %126 = arith.subf %120, %125 : vector<8x32xf32>
      %127 = arith.mulf %126, %126 : vector<8x32xf32>
      %cst_80 = arith.constant dense<0.000000e+00> : vector<8xf32>
      %128 = vector.multi_reduction <add>, %127, %cst_80 [1] : vector<8x32xf32> to vector<8xf32>
      %129 = vector.shape_cast %128 : vector<8xf32> to vector<8x1xf32>
      %cst_81 = arith.constant 3.200000e+01 : f32
      %130 = vector.broadcast %cst_81 : f32 to vector<8x1xf32>
      %131 = arith.divf %129, %130 : vector<8x1xf32>
      %132 = vector.broadcast %124 : vector<8x1xf32> to vector<8x32xf32>
      %133 = arith.subf %120, %132 : vector<8x32xf32>
      %cst_82 = arith.constant 1.000000e-07 : f32
      %134 = vector.broadcast %cst_82 : f32 to vector<8x1xf32>
      %135 = arith.addf %131, %134 : vector<8x1xf32>
      %136 = math.rsqrt %135 : vector<8x1xf32>
      %137 = vector.broadcast %136 : vector<8x1xf32> to vector<8x32xf32>
      %138 = arith.mulf %133, %137 : vector<8x32xf32>
      %c0_83 = arith.constant 0 : index
      %c0_84 = arith.constant 0 : index
      %139 = vector.load %arg19[%c0_83, %c0_84] : memref<1x32xf32, #tpu.memory_space<vmem>>, vector<1x32xf32>
      %140 = vector.broadcast %139 : vector<1x32xf32> to vector<8x32xf32>
      %141 = arith.mulf %138, %140 : vector<8x32xf32>
      %c0_85 = arith.constant 0 : index
      %c0_86 = arith.constant 0 : index
      %142 = vector.load %arg20[%c0_85, %c0_86] : memref<1x32xf32, #tpu.memory_space<vmem>>, vector<1x32xf32>
      %143 = vector.broadcast %142 : vector<1x32xf32> to vector<8x32xf32>
      %144 = arith.addf %141, %143 : vector<8x32xf32>
      %c0_87 = arith.constant 0 : index
      %c0_88 = arith.constant 0 : index
      %c0_89 = arith.constant 0 : index
      %145 = vector.load %arg21[%c0_87, %c0_88, %c0_89] : memref<1x8x32xf32, #tpu.memory_space<vmem>>, vector<1x8x32xf32>
      %146 = vector.shape_cast %145 : vector<1x8x32xf32> to vector<8x32xf32>
      %147 = vector.shape_cast %144 : vector<8x32xf32> to vector<1x8x32xf32>
      tpu.vector_store %arg21[%c0_87, %c0_88, %c0_89], %147 {strides = array<i32>} : memref<1x8x32xf32, #tpu.memory_space<vmem>>, vector<1x8x32xf32>,
    } else {
    }
    return
  }
  func.func @transform_0(%arg0: i32, %arg1: i32) -> (i32, i32, i32) {
    %c0_i32 = arith.constant 0 : i32
    %c0_i32_0 = arith.constant 0 : i32
    %c0_i32_1 = arith.constant 0 : i32
    return %arg0, %c0_i32, %c0_i32_0 : i32, i32, i32
  }
  func.func @transform_1(%arg0: i32, %arg1: i32) -> (i32, i32, i32, i32) {
    %c0_i32 = arith.constant 0 : i32
    %c0_i32_0 = arith.constant 0 : i32
    %c0_i32_1 = arith.constant 0 : i32
    return %arg1, %arg0, %c0_i32, %c0_i32_0 : i32, i32, i32, i32
  }
  func.func @transform_2(%arg0: i32, %arg1: i32) -> (i32, i32, i32) {
    %c0_i32 = arith.constant 0 : i32
    %c0_i32_0 = arith.constant 0 : i32
    %c0_i32_1 = arith.constant 0 : i32
    return %arg1, %c0_i32, %c0_i32_0 : i32, i32, i32
  }
  func.func @transform_3(%arg0: i32, %arg1: i32) -> (i32, i32, i32) {
    %c0_i32 = arith.constant 0 : i32
    %c0_i32_0 = arith.constant 0 : i32
    %c0_i32_1 = arith.constant 0 : i32
    return %arg1, %c0_i32, %c0_i32_0 : i32, i32, i32
  }
  func.func @transform_4(%arg0: i32, %arg1: i32) -> (i32, i32, i32) {
    %c0_i32 = arith.constant 0 : i32
    %c0_i32_0 = arith.constant 0 : i32
    %c0_i32_1 = arith.constant 0 : i32
    return %arg1, %c0_i32, %c0_i32_0 : i32, i32, i32
  }
  func.func @transform_5(%arg0: i32, %arg1: i32) -> (i32, i32, i32) {
    %c0_i32 = arith.constant 0 : i32
    %c0_i32_0 = arith.constant 0 : i32
    %c0_i32_1 = arith.constant 0 : i32
    return %arg1, %c0_i32, %c0_i32_0 : i32, i32, i32
  }
  func.func @transform_6(%arg0: i32, %arg1: i32) -> (i32, i32, i32) {
    %c0_i32 = arith.constant 0 : i32
    %c0_i32_0 = arith.constant 0 : i32
    %c0_i32_1 = arith.constant 0 : i32
    return %arg1, %c0_i32, %c0_i32_0 : i32, i32, i32
  }
  func.func @transform_7(%arg0: i32, %arg1: i32) -> (i32, i32, i32) {
    %c0_i32 = arith.constant 0 : i32
    %c0_i32_0 = arith.constant 0 : i32
    %c0_i32_1 = arith.constant 0 : i32
    return %arg1, %c0_i32, %c0_i32_0 : i32, i32, i32
  }
  func.func @transform_8(%arg0: i32, %arg1: i32) -> (i32, i32, i32) {
    %c0_i32 = arith.constant 0 : i32
    %c0_i32_0 = arith.constant 0 : i32
    %c0_i32_1 = arith.constant 0 : i32
    return %arg1, %c0_i32, %c0_i32_0 : i32, i32, i32
  }
  func.func @transform_9(%arg0: i32, %arg1: i32) -> (i32, i32, i32) {
    %c0_i32 = arith.constant 0 : i32
    %c0_i32_0 = arith.constant 0 : i32
    %c0_i32_1 = arith.constant 0 : i32
    return %arg1, %c0_i32, %c0_i32_0 : i32, i32, i32
  }
  func.func @transform_10(%arg0: i32, %arg1: i32) -> (i32, i32, i32) {
    %c0_i32 = arith.constant 0 : i32
    %c0_i32_0 = arith.constant 0 : i32
    %c0_i32_1 = arith.constant 0 : i32
    return %arg1, %c0_i32, %c0_i32_0 : i32, i32, i32
  }
  func.func @transform_11(%arg0: i32, %arg1: i32) -> (i32, i32) {
    %c0_i32 = arith.constant 0 : i32
    %c0_i32_0 = arith.constant 0 : i32
    %c0_i32_1 = arith.constant 0 : i32
    return %c0_i32, %c0_i32_0 : i32, i32
  }
  func.func @transform_12(%arg0: i32, %arg1: i32) -> (i32, i32) {
    %c0_i32 = arith.constant 0 : i32
    %c0_i32_0 = arith.constant 0 : i32
    %c0_i32_1 = arith.constant 0 : i32
    return %c0_i32, %c0_i32_0 : i32, i32
  }
  func.func @transform_13(%arg0: i32, %arg1: i32) -> (i32, i32) {
    %c0_i32 = arith.constant 0 : i32
    %c0_i32_0 = arith.constant 0 : i32
    %c0_i32_1 = arith.constant 0 : i32
    return %c0_i32, %c0_i32_0 : i32, i32
  }
  func.func @transform_14(%arg0: i32, %arg1: i32) -> (i32, i32) {
    %c0_i32 = arith.constant 0 : i32
    %c0_i32_0 = arith.constant 0 : i32
    %c0_i32_1 = arith.constant 0 : i32
    return %c0_i32, %c0_i32_0 : i32, i32
  }
  func.func @transform_15(%arg0: i32, %arg1: i32) -> (i32, i32) {
    %c0_i32 = arith.constant 0 : i32
    %c0_i32_0 = arith.constant 0 : i32
    %c0_i32_1 = arith.constant 0 : i32
    return %c0_i32, %c0_i32_0 : i32, i32
  }
  func.func @transform_16(%arg0: i32, %arg1: i32) -> (i32, i32) {
    %c0_i32 = arith.constant 0 : i32
    %c0_i32_0 = arith.constant 0 : i32
    %c0_i32_1 = arith.constant 0 : i32
    return %c0_i32, %c0_i32_0 : i32, i32
  }
  func.func @transform_17(%arg0: i32, %arg1: i32) -> (i32, i32) {
    %c0_i32 = arith.constant 0 : i32
    %c0_i32_0 = arith.constant 0 : i32
    %c0_i32_1 = arith.constant 0 : i32
    return %c0_i32, %c0_i32_0 : i32, i32
  }
  func.func @transform_18(%arg0: i32, %arg1: i32) -> (i32, i32) {
    %c0_i32 = arith.constant 0 : i32
    %c0_i32_0 = arith.constant 0 : i32
    %c0_i32_1 = arith.constant 0 : i32
    return %c0_i32, %c0_i32_0 : i32, i32
  }
  func.func @transform_19(%arg0: i32, %arg1: i32) -> (i32, i32, i32) {
    %c0_i32 = arith.constant 0 : i32
    %c0_i32_0 = arith.constant 0 : i32
    %c0_i32_1 = arith.constant 0 : i32
    return %arg0, %c0_i32, %c0_i32_0 : i32, i32, i32
  }
}

</mosaic_0001>

<bundles_post_ra>
// kernel: tpu_custom_call.1
= control target key start
LH: loop header
LB: loop body
LE: loop exit
PB: predicated region body
PF: predicated region fallthrough
CT: control target
= control target key end

     0   :  { %s3451_s0 = inlined_call_operand.hbm [shape: f32[2,8,32], index: 0, kind: input, shape index: {}]   ;;  %s3452_s1 = inlined_call_operand.vmem [shape: bf16[2,2,16,128], index: 1, kind: input, shape index: {}]   ;;  %s3453_s2 = inlined_call_operand.vmem [shape: f32[2,1,16], index: 2, kind: input, shape index: {}]   ;;  %s3454_s3 = inlined_call_operand.vmem [shape: bf16[2,32,128], index: 3, kind: input, shape index: {}]   ;;  %s3455_s4 = inlined_call_operand.hbm [shape: f32[2,1,128], index: 4, kind: input, shape index: {}]   ;;  %s3456_s5 = inlined_call_operand.vmem [shape: bf16[2,128,128], index: 5, kind: input, shape index: {}]   ;;  %s3457_s6 = inlined_call_operand.hbm [shape: f32[2,1,128], index: 6, kind: input, shape index: {}]   ;;  %s3458_s7 = inlined_call_operand.hbm [shape: bf16[2,128,128], index: 7, kind: input, shape index: {}]   ;;  %s3459_s8 = inlined_call_operand.hbm [shape: f32[2,1,128], index: 8, kind: input, shape index: {}]   ;;  %s3460_s9 = inlined_call_operand.vmem [shape: bf16[2,128,32], index: 9, kind: input, shape index: {}]   ;;  %s3461_s10 = inlined_call_operand.vmem [shape: f32[2,1,32], index: 10, kind: input, shape index: {}]   ;;  %s3462_s11 = inlined_call_operand.hbm [shape: bf16[32,64], index: 11, kind: input, shape index: {}]   ;;  %s3463_s12 = inlined_call_operand.vmem [shape: f32[1,64], index: 12, kind: input, shape index: {}]   ;;  %s3464_s13 = inlined_call_operand.vmem [shape: bf16[64,32], index: 13, kind: input, shape index: {}]   ;;  %s3465_s14 = inlined_call_operand.vmem [shape: f32[1,32], index: 14, kind: input, shape index: {}]   ;;  %s3466_s15 = inlined_call_operand.vmem [shape: f32[1,32], index: 15, kind: input, shape index: {}]   ;;  %s3467_s16 = inlined_call_operand.vmem [shape: f32[1,32], index: 16, kind: input, shape index: {}]   ;;  %s3468_s17 = inlined_call_operand.vmem [shape: f32[1,32], index: 17, kind: input, shape index: {}]   ;;  %s3469_s18 = inlined_call_operand.vmem [shape: f32[1,32], index: 18, kind: input, shape index: {}]   ;;  %s3470_s19 = inlined_call_operand.hbm [shape: f32[2,8,32], index: 19, kind: output, shape index: {}]  }
   0x1   :  { %3505 = sst [smem:[#allocation37_spill]] %s3451_s0 }
   0x2   :  { %3506 = sst [smem:[#allocation38_spill]] %s3452_s1 }
   0x3   :  { %3507 = sst [smem:[#allocation39_spill]] %s3453_s2 }
   0x4   :  { %3508 = sst [smem:[#allocation40_spill]] %s3454_s3 }
   0x5   :  { %3509 = sst [smem:[#allocation41_spill]] %s3455_s4 }
   0x6   :  { %3510 = sst [smem:[#allocation42_spill]] %s3456_s5 }
   0x7   :  { %3511 = sst [smem:[#allocation43_spill]] %s3457_s6 }
   0x8   :  { %3512 = sst [smem:[#allocation44_spill]] %s3458_s7 }
   0x9   :  { %3513 = sst [smem:[#allocation45_spill]] %s3459_s8 }
   0xa   :  { %3514 = sst [smem:[#allocation46_spill]] %s3460_s9 }
   0xb   :  { %3515 = sst [smem:[#allocation47_spill]] %s3461_s10 }
   0xc   :  { %3516 = sst [smem:[#allocation48_spill]] %s3462_s11 }
   0xd   :  { %3517 = sst [smem:[#allocation49_spill]] %s3463_s12 }
   0xe   :  { %3518 = sst [smem:[#allocation50_spill]] %s3464_s13 }
   0xf   :  { %3519 = sst [smem:[#allocation51_spill]] %s3465_s14 }
  0x10   :  { %3520 = sst [smem:[#allocation52_spill]] %s3466_s15 }
  0x11   :  { %3521 = sst [smem:[#allocation53_spill]] %s3467_s16 }
  0x12   :  { %3522 = sst [smem:[#allocation54_spill]] %s3468_s17 }
  0x13   :  { %3523 = sst [smem:[#allocation55_spill]] %s3469_s18 }
  0x14   :  { %3524 = sst [smem:[#allocation56_spill]] %s3470_s19 }
  0x15   :  { %24 = vsyncpa [#allocation6], 0 }
  0x16   :  { %26 = vsyncpa [#allocation6 + $0x1], 0 }
  0x17   :  { %27 = vsyncpa [#allocation9], 0 }
  0x18   :  { %29 = vsyncpa [#allocation9 + $0x1], 0 }
  0x19   :  { %30 = vsyncpa [#allocation12], 0 }
  0x1a   :  { %32 = vsyncpa [#allocation12 + $0x1], 0 }
  0x1b   :  { %33 = vsyncpa [#allocation15], 0 }
  0x1c   :  { %34 = vsyncpa [#allocation7], 0 }
  0x1d   :  { %36 = vsyncpa [#allocation7 + $0x1], 0  ;;  %s2832_s0 = smov 0   ;;  %s2834_s30 = smov 0  }
  0x1e   :  { %s2836_s20 = smov 0   ;;  %s2838_s21 = smov 0  }
  0x1f   :  { %s2840_s1 = smov 0   ;;  %s2842_s22 = smov 0  }
  0x20   :  { %s2844_s2 = smov 0   ;;  %s2846_s23 = smov 0  }
  0x21   :  { %s2848_s24 = smov 0   ;;  %s2850_s25 = smov 0  }
  0x22   :  { %s2852_s3 = smov 0  }
  0x23 LB: > { %3525 = sst [smem:[#allocation22_spill]] %s2676_s30  ;;  %s51_s26 = sadd.s32 1, %s2704_s24  ;;  %s2712_s3 = sphi %s2852_s3, %s42_s3   ;;  %s2708_s25 = sphi %s2850_s25, %s3615_s25   ;;  %s2704_s24 = sphi %s2848_s24, %s3614_s24   ;;  %s2700_s23 = sphi %s2846_s23, %s3613_s23   ;;  %s2696_s2 = sphi %s2844_s2, %s3612_s2   ;;  %s2692_s22 = sphi %s2842_s22, %s3611_s22   ;;  %s2688_s1 = sphi %s2840_s1, %s3610_s1   ;;  %s2684_s21 = sphi %s2838_s21, %s3609_s21   ;;  %s2680_s20 = sphi %s2836_s20, %s3608_s20   ;;  %s2676_s30 = sphi %s2834_s30, %s3607_s30   ;;  %s2672_s0 = sphi %s2832_s0, %s3606_s0  }
  0x24   : > { %3526 = sst [smem:[#allocation23_spill]] %s2680_s20  ;;  %p3478_p0 = scmp.eq.s32.totalorder %s2712_s3, 0 }
  0x25   : > { %3527 = sst [smem:[#allocation24_spill]] %s2684_s21  ;;  %p2889_p1 = scmp.ge.s32.totalorder %s51_s26, 2 }
  0x26   : > { %3528 = sst [smem:[#allocation25_spill]] %s2688_s1  ;;  %s167_s28 = sadd.s32 1, %s2680_s20 }
  0x27   : > { %3529 = sst [smem:[#allocation26_spill]] %s2692_s22  ;;  %p174_p2 = scmp.ne.s32.totalorder %s2680_s20, %s2676_s30 }
  0x28   : > { %3530 = sst [smem:[#allocation27_spill]] %s2696_s2  ;;  %s3617_s26 = smov (%p2889_p1, %s51_s26), 0 }
  0x29   : > { %3531 = sst [smem:[#allocation28_spill]] %s2700_s23  ;;  %p176_p4 = por %p174_p2, %p3478_p0 }
  0x2a   : > { %3532 = sst [smem:[#allocation29_spill]] %s2704_s24  ;;  %s164_s29 = ssub.s32 %s2704_s24, %s3617_s26 }
  0x2b   : > { %3533 = sst [smem:[#allocation30_spill]] %s2708_s25  ;;  %p3476_p5 = scmp.lt.s32.totalorder %s2712_s3, 4 }
  0x2c   : > { %s3534_s27 = scalar_select %p2889_p1, 1, 0 }
  0x2d   : > { %3535 = sst [smem:[#allocation31_spill]] %s3617_s26  ;;  %p165_p6 = scmp.eq.s32.totalorder %s164_s29, 0 }
  0x2e   : > { %s3477_s19 = sand.u32 1, %s2712_s3   ;;  %s2909_s18 = sand.u32 1, %s2680_s20  }
  0x2f   : > { %s2912_s17 = scalar_select %p165_p6, %s2680_s20, %s167_s28  }
  0x30   : > { %s2915_s14 = sshll.u32 %s2704_s24, 4  ;;  %s3537_s4 = sld [smem:[#allocation41_spill]] }
  0x31   : > { %3536 = sst [smem:[#allocation32_spill]] %s2912_s17  ;;  %s635_s26 = scalar_lea.vmem [#allocation8], %s2909_s18 }
  0x32   : > { %s642_s29 = sshll.u32 %s635_s26, 4  ;;  %p2928_p7 = pnand %p3476_p5, %p176_p4  ;;  %s2924_s29 = int_to_ptr.vmem [resolvable:$true] %s642_s29 }
  0x33   : > { %s2934_s17 = scalar_lea.sflag [#allocation9], %s3477_s19 }
  0x34   : > { %s3538_s28 = scalar_select %p2928_p7, 1, 0 }
  0x35   : > { %p2940_p9 = pneg %p2928_p7 }
  0x36   : > { %s2921_s15 = scalar_lea.hbm %s3537_s4, %s2915_s14  ;;  %s2405_s13 = scalar_lea.hbm %s3537_s4, 32 }
  0x37   : > { %s2400_s12 = scalar_lea.hbm %s2921_s15, 16  ;;  %p2406_p12 = scmp.lt.u32.totalorder %s2921_s15, %s3537_s4 }
  0x38   : > { %p2401_p8 = scmp.ne.s32.totalorder %s2921_s15, %s2400_s12  ;;  %p2407_p13 = scmp.lt.u32.totalorder %s2405_s13, %s2400_s12 }
  0x39   : > { %s3539_s16 = scalar_select %p2940_p9, 1, 0 }
  0x3a   : > { %p2403_p10 = pnand %p2940_p9, %p2401_p8  ;;  %p2408_p2 = por %p2407_p13, %p2406_p12 }
  0x3b   : > { %p2409_p4 = scmp.lt.u32.totalorder %s2400_s12, %s2921_s15 }
  0x3c   : > { %p2404_p11 = pneg %p2403_p10 }
  0x3d   : > { %p2410_p6 = por %p2409_p4, %p2408_p2 }
  0x3f   : > { %p2411_p5 = pnand %p2410_p6, %p2404_p11 }
  0x41   : > { %2414 = shalt.err (!%p2411_p5)
}
  0x42   : > { %s2415_s19 = scalar_lea.vmem %s2924_s29, 16  ;;  %s2714_s20 = smov [#allocation8]  }
  0x43   : > { %p2416_p8 = scmp.ne.s32.totalorder %s2924_s29, %s2415_s19  ;;  %s2420_s26 = sshll.u32 %s2714_s20, 4  ;;  %s2421_s26 = int_to_ptr.vmem [resolvable:$false] %s2420_s26 }
  0x44   : > { %s2422_s9 = scalar_lea.vmem %s2421_s26, 32  ;;  %p2423_p3 = scmp.lt.s32.totalorder %s2924_s29, %s2421_s26 }
  0x45   : > { %p2418_p10 = pnand %p2416_p8, %p2940_p9  ;;  %p2424_p1 = scmp.lt.s32.totalorder %s2422_s9, %s2415_s19 }
  0x47   : > { %p2419_p0 = pneg %p2418_p10  ;;  %p2425_p12 = por %p2424_p1, %p2423_p3 }
  0x49   : > { %p2426_p13 = pnand %p2425_p12, %p2419_p0 }
  0x4b   : > { %2429 = shalt.err (!%p2426_p13)
}
  0x4c   : > { %2232 = dma.hbm_to_vmem [thread:$0]  (!%p2928_p7), %s2921_s15, 16, %s2924_s29, %s2934_s17  }
  0x4d   : > { %s1983_s10 = sshll.u32 %s2909_s18, 6  ;;  %s2055_s13 = sshll.u32 %s2704_s24, 10 }
  0x4e   : > { %s3540_s7 = sld [smem:[#allocation44_spill]]  ;;  %s678_s19 = scalar_lea.vmem [#allocation11], %s1983_s10 }
  0x4f   : > { %s685_s9 = sshll.u32 %s678_s19, 4  ;;  %s3541_s4 = sand.u32 1, %s2712_s3   ;;  %s2971_s9 = int_to_ptr.vmem [resolvable:$true] %s685_s9 }
  0x50   : > { %s2975_s5 = scalar_lea.sflag [#allocation12], %s3541_s4 }
  0x54   : > { %s2969_s26 = scalar_lea.hbm %s3540_s7, %s2055_s13  ;;  %s2435_s13 = scalar_lea.hbm %s3540_s7, 2048 }
  0x55   : > { %s2430_s23 = scalar_lea.hbm %s2969_s26, 1024  ;;  %p2436_p5 = scmp.lt.u32.totalorder %s2969_s26, %s3540_s7 }
  0x56   : > { %p2431_p0 = scmp.ne.s32.totalorder %s2969_s26, %s2430_s23  ;;  %p2437_p11 = scmp.lt.u32.totalorder %s2435_s13, %s2430_s23 }
  0x57   : > { %p2439_p4 = scmp.lt.u32.totalorder %s2430_s23, %s2969_s26 }
  0x58   : > { %p2433_p1 = pnand %p2431_p0, %p2940_p9  ;;  %p2438_p2 = por %p2437_p11, %p2436_p5 }
  0x5a   : > { %p2434_p3 = pneg %p2433_p1  ;;  %p2440_p6 = por %p2439_p4, %p2438_p2 }
  0x5c   : > { %p2441_p8 = pnand %p2440_p6, %p2434_p3 }
  0x5e   : > { %2444 = shalt.err (!%p2441_p8)
}
  0x5f   : > { %s2445_s4 = scalar_lea.vmem %s2971_s9, 1024  ;;  %s2715_s10 = smov [#allocation11]  }
  0x60   : > { %p2446_p10 = scmp.ne.s32.totalorder %s2971_s9, %s2445_s4  ;;  %s2450_s19 = sshll.u32 %s2715_s10, 4  ;;  %s2451_s19 = int_to_ptr.vmem [resolvable:$false] %s2450_s19 }
  0x61   : > { %s2452_s15 = scalar_lea.vmem %s2451_s19, 2048  ;;  %p2453_p0 = scmp.lt.s32.totalorder %s2971_s9, %s2451_s19 }
  0x62   : > { %p2448_p12 = pnand %p2446_p10, %p2940_p9  ;;  %p2454_p1 = scmp.lt.s32.totalorder %s2452_s15, %s2445_s4 }
  0x64   : > { %p2449_p13 = pneg %p2448_p12  ;;  %p2455_p5 = por %p2454_p1, %p2453_p0 }
  0x66   : > { %p2456_p11 = pnand %p2455_p5, %p2449_p13 }
  0x68   : > { %2459 = shalt.err (!%p2456_p11)
}
  0x69   : > { %s3481_s23 = smov 64   ;;  %s3482_s29 = smov 4  }
  0x6a   : > { %2238 = dma.hbm_to_vmem [thread:$0]  (!%p2928_p7), %s2969_s26, 1024, %s2971_s9, %s2975_s5, %s3481_s23, %s3481_s23, %s3482_s29  }
  0x6b   : > { %s3003_s13 = sadd.s32 4294967295, %s2712_s3   ;;  %p1976_p3 = scmp.ge.s32.totalorder %s2712_s3, 1 }
  0x6c   : > { %p3483_p2 = scmp.eq.s32.totalorder %s3003_s13, 0  ;;  %p541_p4 = scmp.lt.s32.totalorder %s2712_s3, 5 }
  0x6d   : > { %p3542_p6 = scmp.ne.s32.totalorder %s2676_s30, %s2672_s0  ;;  %s2718_s26 = smov [#allocation14]  }
  0x6e   : > { %p3017_p10 = pnand %p1976_p3, %p541_p4  ;;  %s553_s9 = sshll.u32 %s2718_s26, 4  ;;  %s554_s9 = int_to_ptr.vmem [resolvable:$true] %s553_s9 }
  0x6f   : > { %p3013_p8 = por %p3542_p6, %p3483_p2  ;;  %s3547_s11 = sld [smem:[#allocation48_spill]] }
  0x70   : > { %s3545_s20 = scalar_select %p3017_p10, 1, 0 }
  0x71   : > { %s3543_s12 = scalar_select %p3013_p8, 1, 0 }
  0x72   : > { %p2222_p12 = pneg %p3017_p10 }
  0x73   : > { %3544 = sst [smem:[#allocation33_spill]] %s3543_s12 }
  0x74   : > { %p3025_p13 = pnand %p2222_p12, %p3483_p2 }
  0x75   : > { %s2460_s19 = scalar_lea.hbm %s3547_s11, 256 }
  0x76   : > { %p2461_p0 = scmp.ne.s32.totalorder %s3547_s11, %s2460_s19  ;;  %p2462_p1 = pneg %p3025_p13 }
  0x77   : > { %p2467_p3 = scmp.lt.u32.totalorder %s2460_s19, %s3547_s11 }
  0x78   : > { %p2463_p5 = pnand %p2462_p1, %p2461_p0 }
  0x7a   : > { %p2464_p11 = pneg %p2463_p5 }
  0x7c   : > { %p2469_p4 = pnand %p2467_p3, %p2464_p11 }
  0x7e   : > { %2472 = shalt.err (!%p2469_p4)
}
  0x7f   : > { %s2473_s7 = scalar_lea.vmem %s554_s9, 256  ;;  %p2481_p8 = scmp.lt.s32.totalorder %s554_s9, %s554_s9 }
  0x80   : > { %p2474_p6 = scmp.ne.s32.totalorder %s554_s9, %s2473_s7  ;;  %p2482_p10 = scmp.lt.s32.totalorder %s2473_s7, %s2473_s7 }
  0x82   : > { %p2476_p12 = pnand %p2474_p6, %p2462_p1  ;;  %p2483_p7 = por %p2482_p10, %p2481_p8 }
  0x84   : > { %p2477_p2 = pneg %p2476_p12 }
  0x86   : > { %p2484_p9 = pnand %p2483_p7, %p2477_p2 }
  0x88   : > { %2487 = shalt.err (!%p2484_p9)
}
  0x89   : > { %s3548_s23 = smov 4   ;;  %s3549_s0 = smov 64  }
  0x8a   : > { %2225 = dma.hbm_to_vmem [thread:$0]  (!%p3025_p13), %s3547_s11, 256, %s554_s9, [#allocation15], %s3549_s0, %s3549_s0, %s3548_s23  }
  0x8b   : > { %s1975_s7 = sadd.s32 4294967294, %s2712_s3   ;;  %s54_s29 = sadd.s32 1, %s2708_s25 }
  0x8c   : > { %s61_s4 = sadd.s32 1, %s2692_s22  ;;  %p3550_p7 = scmp.ne.s32.totalorder %s3534_s27, 0 }
  0x8d   : > { %p68_p9 = scmp.ne.s32.totalorder %s2692_s22, %s2688_s1  ;;  %p74_p2 = scmp.ne.s32.totalorder %s2688_s1, %s2684_s21 }
  0x8e   : > { %s3619_s29 = smov (!%p3550_p7, %s54_s29), %s2708_s25  ;;  %p528_p10 = scmp.eq.s32.totalorder %s3003_s13, 3 }
  0x8f   : > { %p56_p8 = scmp.ge.s32.totalorder %s3619_s29, 2  ;;  %p3551_p0 = scmp.eq.s32.totalorder %s2712_s3, 0 }
  0x90   : > { %p3553_p5 = scmp.eq.s32.totalorder %s3003_s13, 0  ;;  %p3073_p11 = por %p528_p10, %p68_p9 }
  0x91   : > { %p3061_p1 = por %p3551_p0, %p68_p9  ;;  %s3621_s29 = smov (%p56_p8, %s3619_s29), 0 }
  0x92   : > { %p3067_p13 = por %p3553_p5, %p74_p2  ;;  %3555 = sst [smem:[#allocation34_spill]] %s3621_s29 }
  0x93   : > { %s3556_s27 = scalar_select %p3073_p11, 1, 0 }
  0x94   : > { %s3554_s9 = scalar_select %p3067_p13, 1, 0 }
  0x95   : > { %p534_p3 = scmp.eq.s32.totalorder %s1975_s7, 3  ;;  %s58_s26 = ssub.s32 %s2708_s25, %s3621_s29 }
  0x96   : > { %s588_s23 = sand.u32 1, %s2692_s22   ;;  %p59_p4 = scmp.eq.s32.totalorder %s58_s26, 0 }
  0x97   : > { %p3080_p6 = por %p534_p3, %p74_p2  ;;  %s1979_s10 = sshll.u32 %s588_s23, 3 }
  0x98   : > { %s3085_s15 = scalar_select %p59_p4, %s2692_s22, %s61_s4  }
  0x99   : > { %s3557_s0 = scalar_select %p3080_p6, 1, 0 }
  0x9a   : > { %3559 = sst [smem:[#allocation36_spill]] %s3085_s15  ;;  %s1980_s11 = sshll.u32 %s2708_s25, 7 }
  0x9b   : > { %3558 = sst [smem:[#allocation35_spill]] %s3557_s0  ;;  %s3560_s2 = sld [smem:[#allocation37_spill]] }
  0x9c   : > { %s592_s7 = scalar_lea.vmem [#allocation5], %s1979_s10  ;;  %p3562_p12 = scmp.lt.s32.totalorder %s2712_s3, 4 }
  0x9d   : > { %s599_s29 = sshll.u32 %s592_s7, 4  ;;  %s3564_s6 = sld [smem:[#allocation43_spill]]  ;;  %s3093_s29 = int_to_ptr.vmem [resolvable:$true] %s599_s29 }
  0x9e   : > { %p3099_p7 = pnand %p3562_p12, %p3061_p1  ;;  %s660_s21 = scalar_lea.vmem [#allocation10], %s2909_s18 }
  0x9f   : > { %s589_s24 = scalar_lea.sflag [#allocation6], %s588_s23 }
  0xa0   : > { %p2490_p2 = pneg %p3099_p7 }
  0xa1   : > { %s3561_s12 = smov %s3560_s2  ;;  %s3091_s30 = scalar_lea.hbm %s3560_s2, %s1980_s11 }
  0xa2   : > { %s3110_s2 = sshll.u32 %s660_s21, 4  ;;  %s2488_s10 = scalar_lea.hbm %s3091_s30, 128  ;;  %s668_s2 = int_to_ptr.vmem [resolvable:$true] %s3110_s2 }
  0xa3   : > { %s3107_s11 = scalar_lea.hbm %s3564_s6, %s2915_s14  ;;  %p2489_p9 = scmp.ne.s32.totalorder %s3091_s30, %s2488_s10 }
  0xa4   : > { %s2493_s25 = scalar_lea.hbm %s3561_s12, 256  ;;  %p2494_p0 = scmp.lt.u32.totalorder %s3091_s30, %s3561_s12 }
  0xa5   : > { %p2491_p8 = pnand %p2490_p2, %p2489_p9  ;;  %p2495_p1 = scmp.lt.u32.totalorder %s2493_s25, %s2488_s10 }
  0xa6   : > { %p2497_p3 = scmp.lt.u32.totalorder %s2488_s10, %s3091_s30 }
  0xa7   : > { %p2492_p10 = pneg %p2491_p8  ;;  %p2496_p5 = por %p2495_p1, %p2494_p0 }
  0xa9   : > { %p2498_p4 = por %p2497_p3, %p2496_p5 }
  0xab   : > { %p2499_p12 = pnand %p2498_p4, %p2492_p10 }
  0xad   : > { %2502 = shalt.err (!%p2499_p12)
}
  0xae   : > { %s2503_s23 = scalar_lea.vmem %s3093_s29, 128  ;;  %s2719_s21 = smov [#allocation5]  }
  0xaf   : > { %p2504_p9 = scmp.ne.s32.totalorder %s3093_s29, %s2503_s23  ;;  %s2508_s19 = sshll.u32 %s2719_s21, 4  ;;  %s2509_s19 = int_to_ptr.vmem [resolvable:$false] %s2508_s19 }
  0xb0   : > { %s2510_s15 = scalar_lea.vmem %s2509_s19, 256  ;;  %p2511_p11 = scmp.lt.s32.totalorder %s3093_s29, %s2509_s19 }
  0xb1   : > { %p2506_p8 = pnand %p2504_p9, %p2490_p2  ;;  %p2512_p0 = scmp.lt.s32.totalorder %s2510_s15, %s2503_s23 }
  0xb3   : > { %p2507_p6 = pneg %p2506_p8  ;;  %p2513_p1 = por %p2512_p0, %p2511_p11 }
  0xb5   : > { %p2514_p5 = pnand %p2513_p1, %p2507_p6 }
  0xb7   : > { %2517 = shalt.err (!%p2514_p5)
}
  0xb8   : > { %2229 = dma.hbm_to_vmem [thread:$0]  (!%p3099_p7), %s3091_s30, 128, %s3093_s29, %s589_s24  }
  0xb9   : > { %s2518_s10 = scalar_lea.hbm %s3107_s11, 16  ;;  %p3565_p10 = scmp.ne.s32.totalorder %s3539_s16, 0 }
  0xba   : > { %p2519_p2 = scmp.ne.s32.totalorder %s3107_s11, %s2518_s10  ;;  %s2523_s4 = scalar_lea.hbm %s3564_s6, 32 }
  0xbb   : > { %p2524_p11 = scmp.lt.u32.totalorder %s3107_s11, %s3564_s6  ;;  %p2525_p6 = scmp.lt.u32.totalorder %s2523_s4, %s2518_s10 }
  0xbc   : > { %p2521_p3 = pnand %p2519_p2, %p3565_p10  ;;  %p2527_p9 = scmp.lt.u32.totalorder %s2518_s10, %s3107_s11 }
  0xbd   : > { %p2526_p12 = por %p2525_p6, %p2524_p11 }
  0xbe   : > { %p2522_p4 = pneg %p2521_p3 }
  0xbf   : > { %p2528_p8 = por %p2527_p9, %p2526_p12 }
  0xc1   : > { %p2529_p0 = pnand %p2528_p8, %p2522_p4 }
  0xc3   : > { %2532 = shalt.err (!%p2529_p0)
}
  0xc4   : > { %s2533_s30 = scalar_lea.vmem %s668_s2, 16  ;;  %s2720_s29 = smov [#allocation10]  }
  0xc5   : > { %p2534_p7 = scmp.ne.s32.totalorder %s668_s2, %s2533_s30  ;;  %s2538_s24 = sshll.u32 %s2720_s29, 4  ;;  %s2539_s24 = int_to_ptr.vmem [resolvable:$false] %s2538_s24 }
  0xc6   : > { %s2540_s21 = scalar_lea.vmem %s2539_s24, 32  ;;  %p2541_p2 = scmp.lt.s32.totalorder %s668_s2, %s2539_s24 }
  0xc7   : > { %p2536_p1 = pnand %p2534_p7, %p3565_p10  ;;  %p2542_p3 = scmp.lt.s32.totalorder %s2540_s21, %s2533_s30 }
  0xc9   : > { %p2537_p5 = pneg %p2536_p1  ;;  %p2543_p13 = por %p2542_p3, %p2541_p2 }
  0xcb   : > { %p2544_p6 = pnand %p2543_p13, %p2537_p5 }
  0xcd   : > { %2547 = shalt.err (!%p2544_p6)
}
  0xce   : > { %p3566_p11 = scmp.ne.s32.totalorder %s3538_s28, 0  ;;  %s3567_s8 = sld [smem:[#allocation45_spill]] }
  0xcf   : > { %s698_s7 = scalar_lea.vmem [#allocation13], %s2909_s18 }
  0xd0   : > { %2235 = dma.hbm_to_vmem [thread:$0]  (!%p3566_p11), %s3107_s11, 16, %s668_s2, %s2934_s17  }
  0xd1   : > { %s705_s25 = sshll.u32 %s698_s7, 4  ;;  %s706_s25 = int_to_ptr.vmem [resolvable:$true] %s705_s25 }
  0xd4   : > { %s3160_s10 = scalar_lea.hbm %s3567_s8, %s2915_s14  ;;  %s2553_s17 = scalar_lea.hbm %s3567_s8, 32 }
  0xd5   : > { %s2548_s4 = scalar_lea.hbm %s3160_s10, 16  ;;  %p2554_p9 = scmp.lt.u32.totalorder %s3160_s10, %s3567_s8 }
  0xd6   : > { %p2549_p13 = scmp.ne.s32.totalorder %s3160_s10, %s2548_s4  ;;  %p2555_p8 = scmp.lt.u32.totalorder %s2553_s17, %s2548_s4 }
  0xd7   : > { %p2557_p7 = scmp.lt.u32.totalorder %s2548_s4, %s3160_s10 }
  0xd8   : > { %p2551_p4 = pnand %p2549_p13, %p3565_p10  ;;  %p2556_p0 = por %p2555_p8, %p2554_p9 }
  0xda   : > { %p2552_p12 = pneg %p2551_p4  ;;  %p2558_p1 = por %p2557_p7, %p2556_p0 }
  0xdc   : > { %p2559_p5 = pnand %p2558_p1, %p2552_p12 }
  0xde   : > { %2562 = shalt.err (!%p2559_p5)
}
  0xdf   : > { %s2563_s14 = scalar_lea.vmem %s706_s25, 16  ;;  %s2721_s18 = smov [#allocation13]  }
  0xe0   : > { %p2564_p2 = scmp.ne.s32.totalorder %s706_s25, %s2563_s14  ;;  %s2568_s30 = sshll.u32 %s2721_s18, 4  ;;  %s2569_s30 = int_to_ptr.vmem [resolvable:$false] %s2568_s30 }
  0xe1   : > { %s2570_s29 = scalar_lea.vmem %s2569_s30, 32  ;;  %p2571_p13 = scmp.lt.s32.totalorder %s706_s25, %s2569_s30 }
  0xe2   : > { %p2566_p3 = pnand %p2564_p2, %p3565_p10  ;;  %p2572_p4 = scmp.lt.s32.totalorder %s2570_s29, %s2563_s14 }
  0xe4   : > { %p2567_p6 = pneg %p2566_p3  ;;  %p2573_p11 = por %p2572_p4, %p2571_p13 }
  0xe6   : > { %p2574_p8 = pnand %p2573_p11, %p2567_p6 }
  0xe8   : > { %2577 = shalt.err (!%p2574_p8)
}
  0xe9   : > { %p3568_p9 = scmp.ne.s32.totalorder %s3538_s28, 0  ;;  %p3569_p12 = scmp.ne.s32.totalorder %s3545_s20, 0 }
  0xea   : > { %s3184_s16 = sand.u32 (!%p3569_p12), 1, %s2688_s1   ;;  %p3570_p10 = scmp.ne.s32.totalorder (!%p3569_p12), %s3554_s9, 0 }
  0xeb   : > { %2241 = dma.hbm_to_vmem [thread:$0]  (!%p3568_p9), %s3160_s10, 16, %s706_s25, %s2975_s5  }
  0xec   : > { %728 = sbr.rel (%p3569_p12) target bundleno = 2458 (0x99a), region = 96  ;;  %s3500_s24 = sshll.u32 (!%p3569_p12), %s3184_s16, 3 }
  0xed   : > { %s731_s21 = scalar_lea.sflag (!%p3569_p12), [#allocation6], %s3184_s16  ;;  %s3190_s19 = scalar_lea.vmem (!%p3569_p12), [#allocation5], %s3500_s24 }
  0xf3   : > { %2651 = dma.done.wait (%p3570_p10), %s731_s21, 128  }
  0xf4   : > { %2653 = vsyncadd (%p3570_p10), %s731_s21, 4294967168  ;;  %s3571_s5 = sld [smem:[#allocation22_spill]]  ;;  %s3572_s28 = sld [smem:[#allocation33_spill]] }
  0xf5   : > { %s739_s20 = sand.u32 1, %s3003_s13  }
  0xf6   : > { %s740_s10 = scalar_lea.sflag [#allocation9], %s739_s20 }
  0xfa   : > { %s3198_s15 = sand.u32 1, %s3571_s5   ;;  %p3573_p11 = scmp.ne.s32.totalorder %s3572_s28, 0 }
  0xfc   : > { %2655 = dma.done.wait (%p3573_p11), %s740_s10, 32  }
  0xfd   : > { %2657 = vsyncadd (%p3573_p11), %s740_s10, 4294967264  ;;  %s1989_s25 = sshll.u32 %s3198_s15, 6  ;;  %s756_s4 = scalar_lea.sflag [#allocation12], %s739_s20 }
  0xfe   : > { %s3207_s26 = scalar_lea.vmem [#allocation11], %s1989_s25 }
  0xff   : > { %2659 = dma.done.wait (%p3573_p11), %s756_s4, 1040  }
 0x100   : > { %2661 = vsyncadd (%p3573_p11), %s756_s4, 4294966256  ;;  %p3574_p0 = scmp.eq.s32.totalorder %s3003_s13, 0 }
 0x102   : > { %2663 = dma.done.wait (%p3574_p0), [#allocation15], 256   ;;  %p3575_p7 = pmov %p3574_p0 }
 0x103   : > { %s3576_s17 = sld [smem:[#allocation27_spill]]  ;;  %s3577_s11 = sld [smem:[#allocation28_spill]] }
 0x104   : > { %2665 = vsyncadd (%p3575_p7), [#allocation15], 4294967040  ;;  %s3578_s13 = sld [smem:[#allocation39_spill]]  ;;  %s3579_s25 = sld [smem:[#allocation40_spill]] }
 0x105   : > { %s3580_s6 = sld [smem:[#allocation38_spill]]  ;;  %s3581_s1 = sld [smem:[#allocation42_spill]] }
 0x106   : > { %s3582_s30 = sld [smem:[#allocation46_spill]]  ;;  %s3584_s20 = sshll.u32 %s3184_s16, 3 }
 0x107   : > { %s3255_s10 = scalar_lea.vmem [#allocation16], %s3584_s20 }
 0x109   : > { %p873_p1 = scmp.lt.s32.totalorder %s3576_s17, 1  ;;  %p875_p5 = scmp.lt.s32.totalorder %s3577_s11, 1 }
 0x10a   : > { %p2001_p2 = scmp.ne.s32.totalorder %s3576_s17, 0 }
 0x10b   : > { %s3221_s2 = scalar_select %p873_p1, %s3576_s17, 1 }
 0x10c   : > { %s3623_s11 = smov (!%p875_p5, %s3577_s11), 1  ;;  %vm908_vm0 = vcmask (!%p2001_p2), 7168   ;;  %vm911_vm1 = vcmask (!%p2001_p2), 261120   ;;  %v2722_v0 = vmov (!%p2001_p2), -1e+30   ;;  %v2723_v1 = vmov (!%p2001_p2), 0.0  }
 0x10d   : > { %s1993_s14 = sshll.u32 %s3221_s2, 2  ;;  %s884_s29 = scalar_lea.vmem %s3578_s13, %s3221_s2  ;;  %909 = vst.msk [vmem:[#allocation2] sm:$0xff] (!%p2001_p2), %vm908_vm0, %v2722_v0  ;;  %910 = vst.msk [vmem:[#allocation3] sm:$0xff] (!%p2001_p2), %vm908_vm0, %v2723_v1 }
 0x10e   : > { %s1992_s21 = sshll.u32 %s3623_s11, 1  ;;  %s2056_s5 = sshll.u32 %s3221_s2, 4  ;;  %912 = vst.msk [vmem:[#allocation4] sm:$0xff] (!%p2001_p2), %vm911_vm1, %v2723_v1 }
 0x10f   : > { %s879_s28 = sadd.s32 %s1993_s14, %s1992_s21  ;;  %s889_s4 = scalar_lea.vmem %s3579_s25, %s2056_s5 }
 0x110   : > { %s1994_s23 = sshll.u32 %s879_s28, 2  ;;  %s2057_s7 = sshll.u32 %s3221_s2, 6 }
 0x111   : > { %s3237_s8 = scalar_lea.vmem %s3580_s6, %s1994_s23  ;;  %s3242_s0 = scalar_lea.vmem %s3581_s1, %s2057_s7 }
 0x112   : > { %s3247_s14 = scalar_lea.vmem %s3582_s30, %s2057_s7  ;;  %s3583_s5 = sld [smem:[#allocation47_spill]] }
 0x113   : > { %907 = sbr.rel (%p2001_p2) target bundleno = 282 (0x11a), region = 124 }
 0x118   : > { %s902_s28 = scalar_lea.vmem %s3583_s5, %s3221_s2 }
 0x11a PF: > { %v2352_v2 = vld [vmem:[%s889_s4] sm:$0xff]   ;;  %v2724_v3 = vmov 0.0   ;;  %v2353_v4 = vld [vmem:[%s889_s4 + $0x8] sm:$0xff]   ;;  %vm2725_vm2 = vmmov 0   ;;  %vm940_vm3 = vcmask 261120   ;;  %v2356_v9 = vld [vmem:[%s3242_s0 + $0x10] sm:$0xff]  }
 0x11b   : > { %2102 = vmatprep.subr.bf16.mxu1 %v2724_v3  ;;  %2130 = vmatprep.subr.bf16.mxu0 %v2724_v3  ;;  %v3263_v5 = vld [vmem:[%s3190_s19] sm:$0xff]  ;;  %v2355_v8 = vld [vmem:[%s3242_s0 + $0x8] sm:$0xff]   ;;  %v2360_v13 = vld [vmem:[%s3242_s0 + $0x30] sm:$0xff]   ;;  %v2726_v16 = vmov 0.0|0.0   ;;  %s3585_s6 = scalar_lea.vmem [#allocation10], %s3198_s15  ;;  %vm1291_vm4 = vcmask 130048  }
 0x11c   : > { %2103 = vmatpush3.bf16.msra.mxu1 %v2352_v2  ;;  %2106 = vmatprep.mubr.msk.bf16.mxu1 %vm2725_vm2, %v2724_v3  ;;  %v916_v6 = vpack.c.bf16 %v3263_v5, %v3263_v5  ;;  %v2354_v7 = vld [vmem:[%s3242_s0] sm:$0xff]   ;;  %v2357_v10 = vld [vmem:[%s3242_s0 + $0x18] sm:$0xff]   ;;  %v2359_v12 = vld [vmem:[%s3242_s0 + $0x28] sm:$0xff]   ;;  %v2727_v51 = vmov 0   ;;  %vm1472_vm5 = vcmask 7168   ;;  %s3590_s7 = sld [smem:[#allocation27_spill]] }
 0x11d   : > { %2104 = vmatprep.subr.bf16.mxu1 %v2724_v3  ;;  %2146 = vmatprep.mubr.msk.bf16.mxu0 %vm2725_vm2, %v2724_v3  ;;  %v2358_v11 = vld [vmem:[%s3242_s0 + $0x20] sm:$0xff]   ;;  %v2361_v14 = vld [vmem:[%s3242_s0 + $0x38] sm:$0xff]   ;;  %v2363_v17 = vld [vmem:[%s3207_s26] sm:$0xff]   ;;  %s3588_s0 = scalar_lea.vmem [#allocation13], %s3198_s15 }
 0x11e   : > { %v2362_v15 = vld [vmem:[%s3237_s8] sm:$0xff]   ;;  %2131 = vmatpush3.bf16.msra.mxu0 %v2363_v17  ;;  %v2364_v18 = vld [vmem:[%s3207_s26 + $0x8] sm:$0xff]   ;;  %v2367_v21 = vld [vmem:[%s3207_s26 + $0x20] sm:$0xff]   ;;  %s3586_s8 = scalar_lea.vmem [#allocation8], %s3198_s15  ;;  %2350 = vset.pattern.permute.xlu1 %v2727_v51 }
 0x11f   : > { %2132 = vmatprep.subr.bf16.mxu0 %v2724_v3  ;;  %v2365_v19 = vld [vmem:[%s3207_s26 + $0x10] sm:$0xff]   ;;  %v2366_v20 = vld [vmem:[%s3207_s26 + $0x18] sm:$0xff]   ;;  %v2368_v22 = vld [vmem:[%s3207_s26 + $0x28] sm:$0xff]   ;;  %2351 = vset.pattern.permute.xlu0 %v2727_v51 }
 0x120   : > { %2105 = vmatpush3.bf16.msra.mxu1 %v2353_v4  ;;  %v2369_v23 = vld [vmem:[%s3207_s26 + $0x30] sm:$0xff]   ;;  %v2370_v24 = vld [vmem:[%s3207_s26 + $0x38] sm:$0xff]   ;;  %v2373_v2 = vld [vmem:[%s3247_s14 + $0x10] sm:$0xff]  }
 0x121   : > { %2110 = vmatprep.subr.bf16.mxu1 %v2724_v3  ;;  %v2006_v29 = vld [vmem:[%s3585_s6] ss:$0 sm:$0xff]  ;;  %v2372_v1 = vld [vmem:[%s3247_s14 + $0x8] sm:$0xff]   ;;  %v2374_v4 = vld [vmem:[%s3247_s14 + $0x18] sm:$0xff]  }
 0x122   : > { %2133 = vmatpush3.bf16.msra.mxu0 %v2364_v18  ;;  %v2002_v37 = vld [vmem:[%s3586_s8] ss:$0 sm:$0xff]  ;;  %p2036_p3 = scmp.ne.s32.totalorder %s3590_s7, 1 }
 0x123   : > { %2107 = vmatmul.mubr.msk.bf16.vlgmr.msra.gmra.mrb[0].mxu1 %vm940_vm3, %v916_v6  ;;  %2134 = vmatprep.subr.bf16.mxu0 %v2724_v3  ;;  %v2025_v39 = vld [vmem:[%s884_s29] ss:$0 sm:$0xff]  ;;  %vm2730_vm6 = vmmov (!%p2036_p3), 0   ;;  %v2389_v51 = vld [vmem:[#allocation14 + $0x8] sm:$0xff] (!%p2036_p3)   ;;  %s3591_s23 = sld [smem:[#allocation50_spill]] (!%p2036_p3)  ;;  %s3593_s18 = sld [smem:[#allocation52_spill]] (!%p2036_p3) }
 0x124   : > { %2111 = vmatpush3.bf16.msra.mxu1 %v2354_v7  ;;  %2126 = vmatprep.mubr.msk.bf16.mxu1 %vm2725_vm2, %v2724_v3  ;;  %v2016_v46 = vld [vmem:[%s3588_s0] ss:$0 sm:$0xff]  ;;  %v2376_v7 = vld [vmem:[%s3247_s14 + $0x28] sm:$0xff]   ;;  %s3595_s8 = sld [smem:[#allocation49_spill]] (!%p2036_p3)  ;;  %vm1642_vm7 = vcmask (!%p2036_p3), 523264   ;;  %s3596_s12 = sld [smem:[#allocation51_spill]] (!%p2036_p3) }
 0x125   : > { %2112 = vmatprep.subr.bf16.mxu1 %v2724_v3  ;;  %v1460_v53 = vld [vmem:[#allocation2] sm:$0xff]  ;;  %s3597_s19 = sld [smem:[#allocation54_spill]] (!%p2036_p3)  ;;  %s3598_s9 = sld [smem:[#allocation55_spill]] (!%p2036_p3) }
 0x126   : > { %2135 = vmatpush3.bf16.msra.mxu0 %v2365_v19  ;;  %v2371_v0 = vld [vmem:[%s3247_s14] sm:$0xff]  }
 0x127   : > { %2136 = vmatprep.subr.bf16.mxu0 %v2724_v3  ;;  %v2375_v6 = vld [vmem:[%s3247_s14 + $0x20] sm:$0xff]  }
 0x128   : > { %2113 = vmatpush3.bf16.msra.mxu1 %v2355_v8  ;;  %v2377_v8 = vld [vmem:[%s3247_s14 + $0x30] sm:$0xff]  }
 0x129   : > { %2114 = vmatprep.subr.bf16.mxu1 %v2724_v3  ;;  %s3592_s17 = smov (!%p2036_p3), %s3591_s23 }
 0x12a   : > { %2137 = vmatpush3.bf16.msra.mxu0 %v2366_v20 }
 0x12b   : > { %2138 = vmatprep.subr.bf16.mxu0 %v2724_v3 }
 0x12c   : > { %2115 = vmatpush3.bf16.msra.mxu1 %v2356_v9  ;;  %v2378_v9 = vld [vmem:[%s3247_s14 + $0x38] sm:$0xff]   ;;  %s3594_s14 = sld [smem:[#allocation53_spill]] (!%p2036_p3) }
 0x12d   : > { %2116 = vmatprep.subr.bf16.mxu1 %v2724_v3 }
 0x12e   : > { %2139 = vmatpush3.bf16.msra.mxu0 %v2367_v21 }
 0x12f   : > { %2140 = vmatprep.subr.bf16.mxu0 %v2724_v3 }
 0x130   : > { %2117 = vmatpush3.bf16.msra.mxu1 %v2357_v10 }
 0x131   : > { %2118 = vmatprep.subr.bf16.mxu1 %v2724_v3 }
 0x132   : > { %2141 = vmatpush3.bf16.msra.mxu0 %v2368_v22 }
 0x133   : > { %2142 = vmatprep.subr.bf16.mxu0 %v2724_v3 }
 0x134   : > { %2119 = vmatpush3.bf16.msra.mxu1 %v2358_v11 }
 0x135   : > { %2120 = vmatprep.subr.bf16.mxu1 %v2724_v3 }
 0x136   : > { %2143 = vmatpush3.bf16.msra.mxu0 %v2369_v23 }
 0x137   : > { %2144 = vmatprep.subr.bf16.mxu0 %v2724_v3 }
 0x138   : > { %2121 = vmatpush3.bf16.msra.mxu1 %v2359_v12  ;;  %v1469_v12 = vld [vmem:[#allocation3] sm:$0xff] }
 0x139   : > { %2122 = vmatprep.subr.bf16.mxu1 %v2724_v3 }
 0x13a   : > { %2145 = vmatpush3.bf16.msra.mxu0 %v2370_v24 }
 0x13b   : > { %2163 = vmatprep.subr.bf16.mxu0 %v2724_v3 }
 0x13c   : > { %2123 = vmatpush3.bf16.msra.mxu1 %v2360_v13 }
 0x13d   : > { %2124 = vmatprep.subr.bf16.mxu1 %v2724_v3  ;;  %2147 = vmatmul.mubr.bf16.vlgmr.msra.gmra.mrb[0].mxu0 %v2362_v15 }
 0x13e   : > { %2179 = vmatprep.mubr.msk.bf16.mxu0 %vm2725_vm2, %v2724_v3  ;;  %2164 = vmatpush3.bf16.msra.mxu0 %v2371_v0  ;;  %v2393_v0 = vld [vmem:[%s3592_s17 + $0x18] sm:$0xff] (!%p2036_p3)  }
 0x13f   : > { %2165 = vmatprep.subr.bf16.mxu0 %v2724_v3 }
 0x140   : > { %2125 = vmatpush3.bf16.msra.mxu1 %v2361_v14 }
 0x141   : > { %2203 = vmatprep.subr.bf16.mxu1 %v2726_v16 }
 0x142   : > { %2166 = vmatpush3.bf16.msra.mxu0 %v2372_v1  ;;  %v2039_v1 = vld [vmem:[%s3595_s8] ss:$0 sm:$0xff] (!%p2036_p3) }
 0x143   : > { %2127 = vmatmul.mubr.bf16.vlgmr.msra.gmra.mrb[4].mxu1 %v2362_v15  ;;  %2167 = vmatprep.subr.bf16.mxu0 %v2724_v3 }
 0x144   : > { %2154 = vmatprep.mubr.msk.f32.mxu1 %vm2725_vm2, %v2724_v3 }
 0x146   : > { %2168 = vmatpush3.bf16.msra.mxu0 %v2373_v2 }
 0x147   : > { %2169 = vmatprep.subr.bf16.mxu0 %v2724_v3 }
 0x14a   : > { %2170 = vmatpush3.bf16.msra.mxu0 %v2374_v4 }
 0x14b   : > { %2171 = vmatprep.subr.bf16.mxu0 %v2724_v3 }
 0x14e   : > { %2172 = vmatpush3.bf16.msra.mxu0 %v2375_v6 }
 0x14f   : > { %2173 = vmatprep.subr.bf16.mxu0 %v2724_v3 }
 0x152   : > { %2174 = vmatpush3.bf16.msra.mxu0 %v2376_v7 }
 0x153   : > { %2175 = vmatprep.subr.bf16.mxu0 %v2724_v3 }
 0x156   : > { %2176 = vmatpush3.bf16.msra.mxu0 %v2377_v8 }
 0x157   : > { %2177 = vmatprep.subr.bf16.mxu0 %v2724_v3 }
 0x15a   : > { %2178 = vmatpush3.bf16.msra.mxu0 %v2378_v9 }
 0x1f6   : > { %v978_v25 = vpop.f32.mrb[0].mxu1 }
 0x1f7   : > { %v2108_v26 = vpop.f32.mrb[1].mxu1  ;;  %v979_v38 = vadd.f32 %v2002_v37, %v978_v25  ;;  %v2027_v25 = vld [vmem:[%s902_s28] ss:$0 sm:$0xff]  ;;  %v2728_v37 = vmov (!%p2036_p3), 0  }
 0x1f8   : > { %v981_v27 = vpop.f32.mrb[2].mxu1  ;;  %v1474_v26 = vld [vmem:[#allocation4] sm:$0xff]  ;;  %2387 = vset.pattern.permute.xlu0 (!%p2036_p3), %v2728_v37 }
 0x1f9   : > { %v2109_v28 = vpop.f32.mrb[3].mxu1 }
 0x210   : > { %v1207_v44 = vpop.f32.mrb[0].mxu0 }
 0x211   : > { %v2148_v45 = vpop.f32.mrb[1].mxu0  ;;  %v1208_v48 = vadd.f32 %v2016_v46, %v1207_v44 }
 0x212   : > { %v1210_v47 = vpop.f32.mrb[2].mxu0 }
 0x213   : > { %v1211_v49 = vadd.f32 %v2016_v46, %v1210_v47  ;;  %v2149_v50 = vpop.f32.mrb[3].mxu0 }
 0x214   : > { %v2729_v50 = vmov (!%p2036_p3), 0.0  }
 0x215   : > { %v1302_v52 = vpack.c.bf16 %v1211_v49, %v1208_v48  ;;  %v2388_v49 = vld [vmem:[#allocation14] sm:$0xff] (!%p2036_p3)   ;;  %2183 = vmatprep.subr.bf16.mxu0 (!%p2036_p3), %v2729_v50 }
 0x216   : > { %v1095_v30 = vpop.f32.mrb[4].mxu1 }
 0x217   : > { %v2128_v31 = vpop.f32.mrb[5].mxu1  ;;  %v1096_v33 = vadd.f32 %v2006_v29, %v1095_v30 }
 0x218   : > { %v1098_v32 = vpop.f32.mrb[6].mxu1 }
 0x219   : > { %v1099_v34 = vadd.f32 %v2006_v29, %v1098_v32  ;;  %v2129_v35 = vpop.f32.mrb[7].mxu1 }
 0x21b   : > { %v2204_v36 = vpack.c.bf16 %v1099_v34, %v1096_v33 }
 0x21d   : > { %2205 = vmatpush3.bf16.xpose.msra.mxu1 %v2204_v36 }
 0x21e   : > { %2157 = vmatprep.subr.bf16.mxu1 %v2724_v3 }
 0x224   : > { %2155 = vmatmul.mubr.f32.vlgmr.msra.gmra.mrb[8].mxu1 %v979_v38 }
 0x225   : > { %2159 = vmatprep.mubr.msk.bf16.mxu1 %vm2725_vm2, %v2724_v3  ;;  %2158 = vmatpush3.bf16.msra.mxu1 %v1302_v52  ;;  %v2391_v52 = vld [vmem:[%s3592_s17 + $0x8] sm:$0xff] (!%p2036_p3)  }
 0x226   : > { %2191 = vmatprep.subr.bf16.mxu1 (!%p2036_p3), %v2729_v50 }
 0x2f7   : > { %v1287_v40 = vpop.f32.mrb[8].mxu1 }
 0x2f8   : > { %v1288_v41 = vadd.f32 %v2025_v39, %v1287_v40  ;;  %v2156_v42 = vpop.f32.mrb[9].mxu1 }
 0x2fa   : > { %v1292_v43 = vsel %vm1291_vm4, %v1288_v41, -inf }
 0x2fb   : > { %1293 = vmax.xlane.f32.xlu0 %v1292_v43 }
 0x388   : > { %v1294_v54 = vpop.xlane.xlu0 %1293 }
 0x389   : > { %v1295_v55 = vsub.f32 %v1288_v41, %v1294_v54  ;;  %v1461_v56 = vmax.f32 %v1460_v53, %v1294_v54 }
 0x38b   : > { %v1296_v57 = vmul.f32 1.442695, %v1295_v55  ;;  %v1462_v58 = vsub.f32 %v1460_v53, %v1461_v56  ;;  %1489 = vst.msk [vmem:[#allocation2] sm:$0xff] %vm1472_vm5, %v1461_v56  ;;  %v1465_v10 = vsub.f32 %v1294_v54, %v1461_v56 }
 0x38d   : > { %2379 = vpow2.f32 %v1296_v57  ;;  %v1463_v59 = vmul.f32 1.442695, %v1462_v58  ;;  %v1466_v11 = vmul.f32 1.442695, %v1465_v10  ;;  %v2037_v57 = vld [vmem:[%s3593_s18] ss:$0 sm:$0xff] (!%p2036_p3) }
 0x38f   : > { %2381 = vpow2.f32 %v1463_v59  ;;  %v2038_v59 = vld [vmem:[%s3594_s14] ss:$0 sm:$0xff] (!%p2036_p3) }
 0x390   : > { %2383 = vpow2.f32 %v1466_v11  ;;  %v2043_v11 = vld [vmem:[%s3596_s12] ss:$0 sm:$0xff] (!%p2036_p3) }
 0x397   : > { %v2380_v60 = vpop.eup %2379 }
 0x398   : > { %v1298_v61 = vsel %vm1291_vm4, %v2380_v60, 0.0  ;;  %v1301_v62 = vpack.c.bf16 %v2380_v60, %v2380_v60 }
 0x399   : > { %v2382_v63 = vpop.eup %2381  ;;  %1299 = vadd.xlane.f32.xlu0 %v1298_v61 }
 0x39a   : > { %1477 = vperm.xlu1 %2350, %v2382_v63   ;;  %2160 = vmatmul.mubr.msk.bf16.vlgmr.msra.gmra.mrb[12].mxu1 %vm1291_vm4, %v1301_v62  ;;  %v2384_v13 = vpop.eup %2383  ;;  %v1470_v15 = vmul.f32 %v2382_v63, %v1469_v12  ;;  %v2392_v63 = vld [vmem:[%s3592_s17 + $0x10] sm:$0xff] (!%p2036_p3)  }
 0x39b   : > { %2199 = vmatprep.mubr.msk.bf16.mxu1 (!%p2036_p3), %vm2730_vm6, %v2729_v50 }
 0x419   : > { %v1478_v24 = vpop.permute.xlu1 %1477 }
 0x41a   : > { %v1480_v32 = vmul.f32 %v1478_v24, %v1474_v26 }
 0x426   : > { %v1300_v14 = vpop.xlane.xlu0 %1299 }
 0x427   : > { %v1468_v16 = vmul.f32 %v2384_v13, %v1300_v14  ;;  %2385 = vrcp.f32 %v1300_v14 }
 0x429   : > { %v1471_v17 = vadd.f32 %v1470_v15, %v1468_v16  ;;  %1483 = vperm.xlu1 %2350, %v1468_v16  }
 0x42b   : > { %1473 = vst.msk [vmem:[#allocation3] sm:$0xff] %vm1472_vm5, %v1471_v17 }
 0x431   : > { %v2386_v18 = vpop.eup %2385 }
 0x432   : > { %v1495_v36 = vld [vmem:[#allocation3] sm:$0xff] (!%p2036_p3) }
 0x433   : > { %1498 = vperm.xlu0 (!%p2036_p3), %2387, %v1495_v36  }
 0x46d   : > { %v1340_v19 = vpop.f32.mrb[12].mxu1 }
 0x46e   : > { %v1347_v20 = vmul.f32 %v2386_v18, %v1340_v19  ;;  %v2161_v3 = vpop.f32.mrb[13].mxu1 }
 0x46f   : > { %v1343_v21 = vpop.f32.mrb[14].mxu1 }
 0x470   : > { %v1348_v22 = vpack.c.bf16 %v1347_v20, %v1347_v20  ;;  %v2162_v23 = vpop.f32.mrb[15].mxu1 }
 0x472   : > { %2180 = vmatmul.mubr.bf16.vlgmr.msra.gmra.mrb[4].mxu0 %v1348_v22 }
 0x473   : > { %2187 = vmatprep.mubr.msk.bf16.mxu0 (!%p2036_p3), %vm2730_vm6, %v2729_v50  ;;  %2184 = vmatpush3.bf16.msra.mxu0 (!%p2036_p3), %v2388_v49 }
 0x474   : > { %2185 = vmatprep.subr.bf16.mxu0 (!%p2036_p3), %v2729_v50 }
 0x477   : > { %2186 = vmatpush3.bf16.msra.mxu0 (!%p2036_p3), %v2389_v51 }
 0x4a8   : > { %v1484_v30 = vpop.permute.xlu1 %1483 }
 0x4b2   : > { %v1499_v38 = vpop.permute.xlu0 (!%p2036_p3), %1498 }
 0x4b3   : > { %2394 = vrcp.f32 (!%p2036_p3), %v1499_v38 }
 0x4bd   : > { %v2395_v40 = vpop.eup (!%p2036_p3), %2394 }
 0x545   : > { %v1454_v27 = vpop.f32.mrb[4].mxu0 }
 0x546   : > { %v1455_v28 = vadd.f32 %v2027_v25, %v1454_v27  ;;  %v2181_v29 = vpop.f32.mrb[5].mxu0  ;;  %1493 = sbr.rel (%p2036_p3) target bundleno = 2431 (0x97f), region = 128  ;;  %v2049_v27 = vld [vmem:[%s3597_s19] ss:$0 sm:$0xff] (!%p2036_p3) }
 0x547   : > { %v1457_v31 = vpop.f32.mrb[6].mxu0  ;;  %v2050_v29 = vld [vmem:[%s3598_s9] ss:$0 sm:$0xff] (!%p2036_p3) }
 0x548   : > { %v1486_v33 = vmul.f32 %v1484_v30, %v1455_v28  ;;  %v2182_v34 = vpop.f32.mrb[7].mxu0 }
 0x54a   : > { %v1487_v35 = vadd.f32 %v1486_v33, %v1480_v32 }
 0x54c   : > { %1488 = vst.msk [vmem:[#allocation4] sm:$0xff] %vm940_vm3, %v1487_v35 }
 0x553   : > { %v1494_v39 = vld [vmem:[#allocation4] sm:$0xff] }
 0x554   : > { %v1502_v41 = vmul.f32 %v2395_v40, %v1494_v39 }
 0x556   : > { %v1503_v42 = vadd.f32 %v1502_v41, %v3263_v5  ;;  %v2390_v5 = vld [vmem:[%s3591_s23] sm:$0xff]  }
 0x557   : > { %2192 = vmatpush3.bf16.msra.mxu1 %v2390_v5 }
 0x558   : > { %v1504_v43 = vsel %vm940_vm3, %v1503_v42, 0.0  ;;  %2193 = vmatprep.subr.bf16.mxu1 %v2729_v50 }
 0x559   : > { %1505 = vadd.xlane.f32.xlu0 %v1504_v43 }
 0x55b   : > { %2194 = vmatpush3.bf16.msra.mxu1 %v2391_v52 }
 0x55c   : > { %2195 = vmatprep.subr.bf16.mxu1 %v2729_v50 }
 0x55f   : > { %2196 = vmatpush3.bf16.msra.mxu1 %v2392_v63 }
 0x560   : > { %2197 = vmatprep.subr.bf16.mxu1 %v2729_v50 }
 0x563   : > { %2198 = vmatpush3.bf16.msra.mxu1 %v2393_v0 }
 0x5e6   : > { %v1506_v44 = vpop.xlane.xlu0 %1505 }
 0x5e7   : > { %v1508_v45 = vmul.f32 0.03125, %v1506_v44 }
 0x5e9   : > { %v1509_v46 = vsub.f32 %v1503_v42, %v1508_v45 }
 0x5eb   : > { %v1510_v47 = vmul.f32 %v1509_v46, %v1509_v46 }
 0x5ed   : > { %v1511_v48 = vsel %vm940_vm3, %v1510_v47, 0.0 }
 0x5ee   : > { %1512 = vadd.xlane.f32.xlu1 %v1511_v48 }
 0x67b   : > { %v1513_v53 = vpop.xlane.xlu1 %1512 }
 0x67c   : > { %v1514_v54 = vmul.f32 0.03125, %v1513_v53 }
 0x67e   : > { %v1515_v55 = vadd.f32 1e-07, %v1514_v54 }
 0x680   : > { %2396 = vrsqrt.f32 %v1515_v55 }
 0x68a   : > { %v2397_v56 = vpop.eup %2396 }
 0x68b   : > { %v1517_v58 = vmul.f32 %v2397_v56, %v1509_v46 }
 0x68d   : > { %v1525_v60 = vmul.f32 %v2037_v57, %v1517_v58 }
 0x68f   : > { %v1533_v61 = vadd.f32 %v2038_v59, %v1525_v60 }
 0x691   : > { %v1534_v62 = vpack.c.bf16 %v1533_v61, %v1533_v61 }
 0x693   : > { %2188 = vmatmul.mubr.msk.bf16.vlgmr.msra.gmra.mrb[0].mxu0 %vm940_vm3, %v1534_v62 }
 0x766   : > { %v1595_v2 = vpop.f32.mrb[0].mxu0 }
 0x767   : > { %v1596_v4 = vadd.f32 %v2039_v1, %v1595_v2  ;;  %v2189_v6 = vpop.f32.mrb[1].mxu0 }
 0x768   : > { %v1598_v7 = vpop.f32.mrb[2].mxu0 }
 0x769   : > { %v1601_v8 = vmax.f32 %v1596_v4, 0.0  ;;  %v2190_v9 = vpop.f32.mrb[3].mxu0 }
 0x76b   : > { %v1602_v10 = vpack.c.bf16 %v1601_v8, %v1601_v8 }
 0x76d   : > { %2200 = vmatmul.mubr.msk.bf16.vlgmr.msra.gmra.mrb[0].mxu1 %vm1642_vm7, %v1602_v10 }
 0x840   : > { %v1680_v12 = vpop.f32.mrb[0].mxu1 }
 0x841   : > { %v1681_v13 = vadd.f32 %v2043_v11, %v1680_v12  ;;  %v2201_v14 = vpop.f32.mrb[1].mxu1 }
 0x842   : > { %v1683_v15 = vpop.f32.mrb[2].mxu1 }
 0x843   : > { %v2202_v16 = vpop.f32.mrb[3].mxu1  ;;  %v1686_v17 = vadd.f32 %v1681_v13, %v1533_v61 }
 0x845   : > { %v1687_v18 = vsel %vm940_vm3, %v1686_v17, 0.0 }
 0x846   : > { %1688 = vadd.xlane.f32.xlu1 %v1687_v18 }
 0x8d3   : > { %v1689_v19 = vpop.xlane.xlu1 %1688 }
 0x8d4   : > { %v1690_v20 = vmul.f32 0.03125, %v1689_v19 }
 0x8d6   : > { %v1691_v3 = vsub.f32 %v1686_v17, %v1690_v20 }
 0x8d8   : > { %v1692_v21 = vmul.f32 %v1691_v3, %v1691_v3 }
 0x8da   : > { %v1693_v22 = vsel %vm940_vm3, %v1692_v21, 0.0 }
 0x8db   : > { %1694 = vadd.xlane.f32.xlu1 %v1693_v22 }
 0x968   : > { %v1695_v23 = vpop.xlane.xlu1 %1694 }
 0x969   : > { %v1696_v24 = vmul.f32 0.03125, %v1695_v23 }
 0x96b   : > { %v1697_v25 = vadd.f32 1e-07, %v1696_v24 }
 0x96d   : > { %2398 = vrsqrt.f32 %v1697_v25 }
 0x977   : > { %v2399_v26 = vpop.eup %2398 }
 0x978   : > { %v1699_v28 = vmul.f32 %v2399_v26, %v1691_v3 }
 0x97a   : > { %v1707_v30 = vmul.f32 %v2049_v27, %v1699_v28 }
 0x97c   : > { %v1715_v31 = vadd.f32 %v2050_v29, %v1707_v30 }
 0x97e   : > { %1716 = vst.msk [vmem:[%s3255_s10] sm:$0xff] %vm940_vm3, %v1715_v31 }
 0x97f PF: > { %s3599_s26 = sld [smem:[#allocation28_spill]]  ;;  %s3600_s25 = sld [smem:[#allocation56_spill]] }
 0x980   : > { %s1731_s11 = sshll.u32 %s3255_s10, 4  ;;  %s1718_s30 = scalar_lea.sflag [#allocation7], %s3184_s16  ;;  %s1732_s11 = int_to_ptr.vmem [resolvable:$true] %s1731_s11 }
 0x981   : > { %s2578_s14 = scalar_lea.vmem %s1732_s11, 128  ;;  %p3602_p13 = scmp.ne.s32.totalorder %s3556_s27, 0 }
 0x982   : > { %p2579_p6 = scmp.ne.s32.totalorder %s1732_s11, %s2578_s14  ;;  %s2731_s13 = smov [#allocation16]  }
 0x983   : > { %s2582_s21 = sshll.u32 %s2731_s13, 4  ;;  %s2583_s21 = int_to_ptr.vmem [resolvable:$false] %s2582_s21 }
 0x984   : > { %p2580_p4 = pnand %p2579_p6, %p3602_p13  ;;  %s2584_s5 = scalar_lea.vmem %s2583_s21, 256 }
 0x985   : > { %s2052_s23 = sshll.u32 %s3599_s26, 7  ;;  %s3601_s4 = smov %s3600_s25 }
 0x986   : > { %s3393_s18 = scalar_lea.hbm %s3600_s25, %s2052_s23  ;;  %p2581_p8 = pneg %p2580_p4 }
 0x987   : > { %p2585_p9 = scmp.lt.s32.totalorder %s1732_s11, %s2583_s21  ;;  %p2586_p12 = scmp.lt.s32.totalorder %s2584_s5, %s2578_s14 }
 0x989   : > { %p2587_p10 = por %p2586_p12, %p2585_p9 }
 0x98b   : > { %p2588_p11 = pnand %p2587_p10, %p2581_p8 }
 0x98d   : > { %2591 = shalt.err (!%p2588_p11)
}
 0x98e   : > { %s2592_s16 = scalar_lea.hbm %s3393_s18, 128  ;;  %s2596_s20 = scalar_lea.hbm %s3601_s4, 256 }
 0x98f   : > { %p2593_p0 = scmp.ne.s32.totalorder %s3393_s18, %s2592_s16  ;;  %p2597_p5 = scmp.lt.u32.totalorder %s3393_s18, %s3601_s4 }
 0x990   : > { %p2598_p2 = scmp.lt.u32.totalorder %s2596_s20, %s2592_s16  ;;  %p2600_p6 = scmp.lt.u32.totalorder %s2592_s16, %s3393_s18 }
 0x991   : > { %p2594_p7 = pnand %p2593_p0, %p3602_p13 }
 0x992   : > { %p2599_p3 = por %p2598_p2, %p2597_p5 }
 0x993   : > { %p2595_p1 = pneg %p2594_p7 }
 0x994   : > { %p2601_p4 = por %p2600_p6, %p2599_p3 }
 0x996   : > { %p2602_p8 = pnand %p2601_p4, %p2595_p1 }
 0x998   : > { %2605 = shalt.err (!%p2602_p8)
}
 0x999   : > { %2220 = dma.vmem_to_hbm [thread:$0]  (%p3602_p13), %s1732_s11, 128, %s3393_s18, %s1718_s30  }
 0x99a PF: > { %s3603_s1 = sld [smem:[#allocation24_spill]]  ;;  %s3604_s22 = sld [smem:[#allocation35_spill]] }
 0x99b   : > { %p2249_p9 = scmp.ge.s32.totalorder %s2712_s3, 2 }
 0x9a0   : > { %s1743_s12 = sand.u32 1, %s3603_s1   ;;  %p3605_p12 = scmp.ne.s32.totalorder %s3604_s22, 0 }
 0x9a1   : > { %s1744_s0 = scalar_lea.sflag [#allocation7], %s1743_s12 }
 0x9a2   : > { %p2243_p10 = pnand %p2249_p9, %p3605_p12 }
 0x9a4   : > { %2667 = dma.done.wait (!%p2243_p10), %s1744_s0, 128  }
 0x9a5   : > { %2669 = vsyncadd (!%p2243_p10), %s1744_s0, 4294967168  ;;  %s42_s3 = sadd.s32 1, %s2712_s3   ;;  %s3606_s0 = sld [smem:[#allocation22_spill]] }
 0x9a6   : > { %p39_p11 = scmp.ge.s32.totalorder %s42_s3, 6   ;;  %s3607_s30 = sld [smem:[#allocation23_spill]] }
 0x9a7   : > { %s3608_s20 = sld [smem:[#allocation32_spill]]  ;;  %s3609_s21 = sld [smem:[#allocation25_spill]] }
 0x9a8   : > { %s3610_s1 = sld [smem:[#allocation26_spill]]  ;;  %s3611_s22 = sld [smem:[#allocation36_spill]] }
 0x9a9   : > { %s3612_s2 = sld [smem:[#allocation29_spill]]  ;;  %s3613_s23 = sld [smem:[#allocation30_spill]] }
 0x9aa   : > { %s3614_s24 = sld [smem:[#allocation31_spill]]  ;;  %s3615_s25 = sld [smem:[#allocation34_spill]] }
 0x9ab   :  { %41 = sbr.rel (!%p39_p11) target bundleno = 35 (0x23), region = 219 }
 0x9b2   :  { %1749 = vsyncpa [#allocation6], 1 }
 0x9b3   :  { %1751 = vsyncpa [#allocation6 + $0x1], 1 }
 0x9b4   :  { %1752 = vsyncpa [#allocation9], 1 }
 0x9b5   :  { %1754 = vsyncpa [#allocation9 + $0x1], 1 }
 0x9b6   :  { %1755 = vsyncpa [#allocation12], 1 }
 0x9b7   :  { %1757 = vsyncpa [#allocation12 + $0x1], 1 }
 0x9b8   :  { %1758 = vsyncpa [#allocation15], 1 }
 0x9b9   :  { %1759 = vsyncpa [#allocation7], 1 }
 0x9ba   :  { %1761 = vsyncpa [#allocation7 + $0x1], 1 }

</bundles_post_ra>
